<compile_context>
chip_gen: v6e
topology: v6e:2x2x1
jax: 0.10.0
libtpu: 0.0.40
codegen_flags: <defaults>
</compile_context>

<pallas_src>
import jax
import jax.numpy as jnp
from jax.experimental import pallas as pl
from jax.experimental.pallas import tpu as pltpu


# ------------------------- fused forward kernel ------------------------------
def _make_gru_forward_kernel(num_layers, hidden_size):
    H = hidden_size

    def kernel(x_ref, *refs):
        # refs = (w_ih0, b_i0, w_hh0, b_h0, ..., fc_w_t, fc_b, out)
        *layer_refs, fcw_ref, fcb_ref, o_ref = refs
        B, T, F_in = x_ref.shape

        # ---------------- hoisted, off-recurrence work -----------------------
        w_ih = [layer_refs[4 * l + 0][...] for l in range(num_layers)]   # bf16 (F_in|H, 3H)
        w_hh = [layer_refs[4 * l + 2][...] for l in range(num_layers)]   # bf16 (H, 3H)
        # Bias broadcasts hoisted once (not re-emitted in the unrolled loops).
        b_h = [jnp.broadcast_to(layer_refs[4 * l + 3][...], (B, 3 * H))
               for l in range(num_layers)]
        b_i = [jnp.broadcast_to(layer_refs[4 * l + 1][...], (B, 3 * H)) if l > 0 else None
               for l in range(num_layers)]

        # Layer 0 input gates for ALL timesteps in one batched matmul.
        x = x_ref[...]                                                    # (B, T, F)
        x2 = x.reshape(B * T, F_in).astype(jnp.bfloat16)                  # batch-major flatten
        gi0 = jnp.dot(x2, w_ih[0], preferred_element_type=jnp.float32)   # (B*T, 3H) f32
        gi0 = gi0.reshape(B, T, 3 * H) + layer_refs[1][...].reshape(1, 1, 3 * H)
        gi0_steps = [gi0[:, t, :] for t in range(T)]                      # hoisted per-step slices

        # ----------------------------- GRU cell ------------------------------
        def cell(gi, gh, h_prev):
            # gi/gh: (B, 3H) with gate blocks [r | z | n] (PyTorch order)
            rz = jax.nn.sigmoid(gi[:, :2 * H] + gh[:, :2 * H])
            r, z = rz[:, :H], rz[:, H:]
            n = jnp.tanh(gi[:, 2 * H:] + r * gh[:, 2 * H:])
            return (1.0 - z) * n + z * h_prev

        # ------------- wavefront recurrence: for t, then layer ---------------
        h = [jnp.zeros((B, H), jnp.float32) for _ in range(num_layers)]
        for t in range(T):
            # layer 0: input gates precomputed, only the K=H hidden dot depends
            gh0 = jnp.dot(h[0].astype(jnp.bfloat16), w_hh[0],
                          preferred_element_type=jnp.float32) + b_h[0]
            h[0] = cell(gi0_steps[t], gh0, h[0])
            # layers 1..L-1: input dot from the layer below (same timestep),
            # hidden dot on the previous own state (off the cross-layer chain).
            for l in range(1, num_layers):
                gi = jnp.dot(h[l - 1].astype(jnp.bfloat16), w_ih[l],
                             preferred_element_type=jnp.float32) + b_i[l]
                gh = jnp.dot(h[l].astype(jnp.bfloat16), w_hh[l],
                             preferred_element_type=jnp.float32) + b_h[l]
                h[l] = cell(gi, gh, h[l])

        # -------- fc on the last timestep's hidden state of the top layer ----
        o_ref[...] = (jnp.dot(h[-1], fcw_ref[...],
                              preferred_element_type=jnp.float32)
                      + fcb_ref[...]).astype(o_ref.dtype)

    return kernel


# ----------------------- parameter init (PyTorch layout) ---------------------
def init_gru_params(key, features, hidden_size, num_layers, horizons):
    """Same shapes / init range as nn.GRU + nn.Linear."""
    k = 1.0 / float(hidden_size) ** 0.5
    params = {"layers": []}
    for l in range(num_layers):
        in_sz = features if l == 0 else hidden_size
        key, k1, k2, k3, k4 = jax.random.split(key, 5)
        params["layers"].append(dict(
            w_ih=jax.random.uniform(k1, (3 * hidden_size, in_sz), jnp.float32, -k, k),
            w_hh=jax.random.uniform(k2, (3 * hidden_size, hidden_size), jnp.float32, -k, k),
            b_ih=jax.random.uniform(k3, (3 * hidden_size,), jnp.float32, -k, k),
            b_hh=jax.random.uniform(k4, (3 * hidden_size,), jnp.float32, -k, k),
        ))
    key, k1, k2 = jax.random.split(key, 3)
    params["fc_w"] = jax.random.uniform(k1, (horizons, hidden_size), jnp.float32, -k, k)
    params["fc_b"] = jax.random.uniform(k2, (horizons,), jnp.float32, -k, k)
    return params


# ----------------------- parameter packing (done once) -----------------------
def pack_gru_params(params, hidden_size):
    """Transpose to (in, 3H) gate-packed form, cast weights to bf16, once."""
    layers = []
    for layer in params["layers"]:
        layers.append((
            layer["w_ih"].T.astype(jnp.bfloat16),            # (F_in, 3H)  [r|z|n]
            layer["b_ih"].reshape(1, -1).astype(jnp.float32),  # (1, 3H)
            layer["w_hh"].T.astype(jnp.bfloat16),            # (H, 3H)    [r|z|n]
            layer["b_hh"].reshape(1, -1).astype(jnp.float32),  # (1, 3H)
        ))
    return {
        "hidden_size": hidden_size,
        "num_layers": len(params["layers"]),
        "layers": layers,
        "fc_w_t": params["fc_w"].T.astype(jnp.float32),      # (H, horizons)
        "fc_b": params["fc_b"].reshape(1, -1).astype(jnp.float32),
    }


# ------------------------------ forward wrapper -------------------------------
def gru_forward(packed, src, trg=None, train=False):
    """Matches GRU.forward(src, trg, train): trg/train unused (as in torch)."""
    H = packed["hidden_size"]
    num_layers = packed["num_layers"]
    B, T, _ = src.shape
    horizons = packed["fc_w_t"].shape[1]

    flat = [a for layer in packed["layers"] for a in layer]
    n_inputs = 1 + len(flat) + 2

    kernel = _make_gru_forward_kernel(num_layers, H)
    return pl.pallas_call(
        kernel,
        out_shape=jax.ShapeDtypeStruct((B, horizons), jnp.float32),
        in_specs=[pl.BlockSpec(memory_space=pltpu.MemorySpace.VMEM)] * n_inputs,
        out_specs=pl.BlockSpec(memory_space=pltpu.MemorySpace.VMEM),
    )(src, *flat, packed["fc_w_t"], packed["fc_b"])


# ------------------------------ pure-JAX reference ----------------------------
def gru_forward_ref(params, src, *, hidden_size, matmul_dtype=jnp.float32):
    """PyTorch-semantics reference; matmul_dtype mimics the kernel's bf16 dots."""
    H = hidden_size
    md = matmul_dtype
    x = src.astype(jnp.float32)                              # (B, T, F)
    B, T, _ = x.shape
    for layer in params["layers"]:
        w_ih = layer["w_ih"].astype(md)
        w_hh = layer["w_hh"].astype(md)
        b_ih, b_hh = layer["b_ih"], layer["b_hh"]
        h = jnp.zeros((B, H), jnp.float32)
        ys = []
        for t in range(T):
            gi = jnp.dot(x[:, t, :].astype(md), w_ih.T,
                         preferred_element_type=jnp.float32) + b_ih
            gh = jnp.dot(h.astype(md), w_hh.T,
                         preferred_element_type=jnp.float32) + b_hh
            r = jax.nn.sigmoid(gi[:, :H] + gh[:, :H])
            z = jax.nn.sigmoid(gi[:, H:2 * H] + gh[:, H:2 * H])
            n = jnp.tanh(gi[:, 2 * H:] + r * gh[:, 2 * H:])
            h = (1.0 - z) * n + z * h
            ys.append(h)
        x = jnp.stack(ys, axis=1)                            # (B, T, H)
    return x[:, -1, :] @ params["fc_w"].T + params["fc_b"]


# ----------------------------------- main -------------------------------------
if __name__ == "__main__":
    hidden_size, num_layers, horizons, features = 32, 2, 4, 8
    B, T = 4, 8

    key = jax.random.PRNGKey(0)
    key, kx, kt = jax.random.split(key, 3)
    src = jax.random.normal(kx, (B, T, features), jnp.float32)
    trg = jax.random.normal(kt, (B, horizons), jnp.float32)   # unused, as in torch forward

    params = init_gru_params(key, features, hidden_size, num_layers, horizons)
    packed = pack_gru_params(params, hidden_size)             # pack + bf16-cast weights once

    out = gru_forward(packed, src, trg, train=True)
    out = jax.block_until_ready(out)

    # Tight check against a reference that mirrors the kernel's bf16 matmuls,
    # loose check against the full-f32 PyTorch-equivalent reference.
    ref_bf16 = gru_forward_ref(params, src, hidden_size=hidden_size,
                               matmul_dtype=jnp.bfloat16)
    ref_f32 = gru_forward_ref(params, src, hidden_size=hidden_size,
                              matmul_dtype=jnp.float32)
    assert out.shape == (B, horizons)
    assert jnp.allclose(out, ref_bf16, atol=2e-3, rtol=2e-3)
    assert jnp.allclose(out, ref_f32, atol=2e-2, rtol=2e-2)

    print("KERNEL_OK")
</pallas_src>

<mosaic_0001>
module attributes {stable_mosaic.version = 11 : i64} {
  func.func @kernel(%arg0: memref<4x8x8xf32, #tpu.memory_space<vmem>>, %arg1: memref<8x96xbf16, #tpu.memory_space<vmem>>, %arg2: memref<1x96xf32, #tpu.memory_space<vmem>>, %arg3: memref<32x96xbf16, #tpu.memory_space<vmem>>, %arg4: memref<1x96xf32, #tpu.memory_space<vmem>>, %arg5: memref<32x96xbf16, #tpu.memory_space<vmem>>, %arg6: memref<1x96xf32, #tpu.memory_space<vmem>>, %arg7: memref<32x96xbf16, #tpu.memory_space<vmem>>, %arg8: memref<1x96xf32, #tpu.memory_space<vmem>>, %arg9: memref<32x4xf32, #tpu.memory_space<vmem>>, %arg10: memref<1x4xf32, #tpu.memory_space<vmem>>, %arg11: memref<4x4xf32, #tpu.memory_space<vmem>>) attributes {dimension_semantics = [], scalar_prefetch = 0 : i64, scratch_operands = 0 : i64, tpu.core_type = #tpu.core_type<tc>} {
    %c0 = arith.constant 0 : index
    %c0_0 = arith.constant 0 : index
    %0 = vector.load %arg1[%c0, %c0_0] : memref<8x96xbf16, #tpu.memory_space<vmem>>, vector<8x96xbf16>
    %c0_1 = arith.constant 0 : index
    %c0_2 = arith.constant 0 : index
    %1 = vector.load %arg5[%c0_1, %c0_2] : memref<32x96xbf16, #tpu.memory_space<vmem>>, vector<32x96xbf16>
    %c0_3 = arith.constant 0 : index
    %c0_4 = arith.constant 0 : index
    %2 = vector.load %arg3[%c0_3, %c0_4] : memref<32x96xbf16, #tpu.memory_space<vmem>>, vector<32x96xbf16>
    %c0_5 = arith.constant 0 : index
    %c0_6 = arith.constant 0 : index
    %3 = vector.load %arg7[%c0_5, %c0_6] : memref<32x96xbf16, #tpu.memory_space<vmem>>, vector<32x96xbf16>
    %c0_7 = arith.constant 0 : index
    %c0_8 = arith.constant 0 : index
    %4 = vector.load %arg4[%c0_7, %c0_8] : memref<1x96xf32, #tpu.memory_space<vmem>>, vector<1x96xf32>
    %5 = vector.shape_cast %4 : vector<1x96xf32> to vector<1x96xf32>
    %6 = vector.broadcast %5 : vector<1x96xf32> to vector<4x96xf32>
    %c0_9 = arith.constant 0 : index
    %c0_10 = arith.constant 0 : index
    %7 = vector.load %arg8[%c0_9, %c0_10] : memref<1x96xf32, #tpu.memory_space<vmem>>, vector<1x96xf32>
    %8 = vector.shape_cast %7 : vector<1x96xf32> to vector<1x96xf32>
    %9 = vector.broadcast %8 : vector<1x96xf32> to vector<4x96xf32>
    %c0_11 = arith.constant 0 : index
    %c0_12 = arith.constant 0 : index
    %10 = vector.load %arg6[%c0_11, %c0_12] : memref<1x96xf32, #tpu.memory_space<vmem>>, vector<1x96xf32>
    %11 = vector.shape_cast %10 : vector<1x96xf32> to vector<1x96xf32>
    %12 = vector.broadcast %11 : vector<1x96xf32> to vector<4x96xf32>
    %c0_13 = arith.constant 0 : index
    %c0_14 = arith.constant 0 : index
    %c0_15 = arith.constant 0 : index
    %13 = vector.load %arg0[%c0_13, %c0_14, %c0_15] : memref<4x8x8xf32, #tpu.memory_space<vmem>>, vector<4x8x8xf32>
    %14 = vector.shape_cast %13 : vector<4x8x8xf32> to vector<32x8xf32>
    %15 = arith.truncf %14 : vector<32x8xf32> to vector<32x8xbf16>
    %cst = arith.constant dense<0.000000e+00> : vector<32x96xf32>
    %16 = tpu.matmul %15, %0, %cst {dimension_numbers = #tpu.dot_dimension_numbers<[1], [0], [0], [1], [0, 0, 1, 1], [], []>} : vector<32x8xbf16>, vector<8x96xbf16>, vector<32x96xf32> -> vector<32x96xf32>
    %17 = vector.shape_cast %16 : vector<32x96xf32> to vector<4x8x96xf32>
    %c0_16 = arith.constant 0 : index
    %c0_17 = arith.constant 0 : index
    %18 = vector.load %arg2[%c0_16, %c0_17] : memref<1x96xf32, #tpu.memory_space<vmem>>, vector<1x96xf32>
    %19 = vector.shape_cast %18 : vector<1x96xf32> to vector<1x1x96xf32>
    %20 = vector.broadcast %19 : vector<1x1x96xf32> to vector<4x8x96xf32>
    %21 = arith.addf %17, %20 : vector<4x8x96xf32>
    %22 = vector.extract_strided_slice %21 {offsets = [0, 0, 0], sizes = [4, 1, 96], strides = [1, 1, 1]} : vector<4x8x96xf32> to vector<4x1x96xf32>
    %23 = vector.shape_cast %22 : vector<4x1x96xf32> to vector<4x96xf32>
    %24 = vector.extract_strided_slice %21 {offsets = [0, 1, 0], sizes = [4, 1, 96], strides = [1, 1, 1]} : vector<4x8x96xf32> to vector<4x1x96xf32>
    %25 = vector.shape_cast %24 : vector<4x1x96xf32> to vector<4x96xf32>
    %26 = vector.extract_strided_slice %21 {offsets = [0, 2, 0], sizes = [4, 1, 96], strides = [1, 1, 1]} : vector<4x8x96xf32> to vector<4x1x96xf32>
    %27 = vector.shape_cast %26 : vector<4x1x96xf32> to vector<4x96xf32>
    %28 = vector.extract_strided_slice %21 {offsets = [0, 3, 0], sizes = [4, 1, 96], strides = [1, 1, 1]} : vector<4x8x96xf32> to vector<4x1x96xf32>
    %29 = vector.shape_cast %28 : vector<4x1x96xf32> to vector<4x96xf32>
    %30 = vector.extract_strided_slice %21 {offsets = [0, 4, 0], sizes = [4, 1, 96], strides = [1, 1, 1]} : vector<4x8x96xf32> to vector<4x1x96xf32>
    %31 = vector.shape_cast %30 : vector<4x1x96xf32> to vector<4x96xf32>
    %32 = vector.extract_strided_slice %21 {offsets = [0, 5, 0], sizes = [4, 1, 96], strides = [1, 1, 1]} : vector<4x8x96xf32> to vector<4x1x96xf32>
    %33 = vector.shape_cast %32 : vector<4x1x96xf32> to vector<4x96xf32>
    %34 = vector.extract_strided_slice %21 {offsets = [0, 6, 0], sizes = [4, 1, 96], strides = [1, 1, 1]} : vector<4x8x96xf32> to vector<4x1x96xf32>
    %35 = vector.shape_cast %34 : vector<4x1x96xf32> to vector<4x96xf32>
    %36 = vector.extract_strided_slice %21 {offsets = [0, 7, 0], sizes = [4, 1, 96], strides = [1, 1, 1]} : vector<4x8x96xf32> to vector<4x1x96xf32>
    %37 = vector.shape_cast %36 : vector<4x1x96xf32> to vector<4x96xf32>
    %cst_18 = arith.constant 0.000000e+00 : f32
    %38 = vector.broadcast %cst_18 : f32 to vector<4x32xf32>
    %cst_19 = arith.constant 0.000000e+00 : f32
    %39 = vector.broadcast %cst_19 : f32 to vector<4x32xf32>
    %40 = arith.truncf %38 : vector<4x32xf32> to vector<4x32xbf16>
    %cst_20 = arith.constant dense<0.000000e+00> : vector<4x96xf32>
    %41 = tpu.matmul %40, %2, %cst_20 {dimension_numbers = #tpu.dot_dimension_numbers<[1], [0], [0], [1], [0, 0, 1, 1], [], []>} : vector<4x32xbf16>, vector<32x96xbf16>, vector<4x96xf32> -> vector<4x96xf32>
    %42 = arith.addf %41, %6 : vector<4x96xf32>
    %43 = vector.extract_strided_slice %23 {offsets = [0, 0], sizes = [4, 64], strides = [1, 1]} : vector<4x96xf32> to vector<4x64xf32>
    %44 = vector.extract_strided_slice %42 {offsets = [0, 0], sizes = [4, 64], strides = [1, 1]} : vector<4x96xf32> to vector<4x64xf32>
    %45 = arith.addf %43, %44 : vector<4x64xf32>
    %46 = arith.negf %45 : vector<4x64xf32>
    %47 = math.exp %46 : vector<4x64xf32>
    %cst_21 = arith.constant 1.000000e+00 : f32
    %48 = vector.broadcast %cst_21 : f32 to vector<4x64xf32>
    %49 = arith.addf %48, %47 : vector<4x64xf32>
    %50 = arith.divf %48, %49 : vector<4x64xf32>
    %51 = vector.extract_strided_slice %50 {offsets = [0, 0], sizes = [4, 32], strides = [1, 1]} : vector<4x64xf32> to vector<4x32xf32>
    %52 = vector.extract_strided_slice %50 {offsets = [0, 32], sizes = [4, 32], strides = [1, 1]} : vector<4x64xf32> to vector<4x32xf32>
    %53 = vector.extract_strided_slice %23 {offsets = [0, 64], sizes = [4, 32], strides = [1, 1]} : vector<4x96xf32> to vector<4x32xf32>
    %54 = vector.extract_strided_slice %42 {offsets = [0, 64], sizes = [4, 32], strides = [1, 1]} : vector<4x96xf32> to vector<4x32xf32>
    %55 = arith.mulf %51, %54 : vector<4x32xf32>
    %56 = arith.addf %53, %55 : vector<4x32xf32>
    %57 = math.tanh %56 : vector<4x32xf32>
    %cst_22 = arith.constant 1.000000e+00 : f32
    %58 = vector.broadcast %cst_22 : f32 to vector<4x32xf32>
    %59 = arith.subf %58, %52 : vector<4x32xf32>
    %60 = arith.mulf %59, %57 : vector<4x32xf32>
    %61 = arith.mulf %52, %38 : vector<4x32xf32>
    %62 = arith.addf %60, %61 : vector<4x32xf32>
    %63 = arith.truncf %62 : vector<4x32xf32> to vector<4x32xbf16>
    %cst_23 = arith.constant dense<0.000000e+00> : vector<4x96xf32>
    %64 = tpu.matmul %63, %1, %cst_23 {dimension_numbers = #tpu.dot_dimension_numbers<[1], [0], [0], [1], [0, 0, 1, 1], [], []>} : vector<4x32xbf16>, vector<32x96xbf16>, vector<4x96xf32> -> vector<4x96xf32>
    %65 = arith.addf %64, %12 : vector<4x96xf32>
    %66 = arith.truncf %39 : vector<4x32xf32> to vector<4x32xbf16>
    %cst_24 = arith.constant dense<0.000000e+00> : vector<4x96xf32>
    %67 = tpu.matmul %66, %3, %cst_24 {dimension_numbers = #tpu.dot_dimension_numbers<[1], [0], [0], [1], [0, 0, 1, 1], [], []>} : vector<4x32xbf16>, vector<32x96xbf16>, vector<4x96xf32> -> vector<4x96xf32>
    %68 = arith.addf %67, %9 : vector<4x96xf32>
    %69 = vector.extract_strided_slice %65 {offsets = [0, 0], sizes = [4, 64], strides = [1, 1]} : vector<4x96xf32> to vector<4x64xf32>
    %70 = vector.extract_strided_slice %68 {offsets = [0, 0], sizes = [4, 64], strides = [1, 1]} : vector<4x96xf32> to vector<4x64xf32>
    %71 = arith.addf %69, %70 : vector<4x64xf32>
    %72 = arith.negf %71 : vector<4x64xf32>
    %73 = math.exp %72 : vector<4x64xf32>
    %cst_25 = arith.constant 1.000000e+00 : f32
    %74 = vector.broadcast %cst_25 : f32 to vector<4x64xf32>
    %75 = arith.addf %74, %73 : vector<4x64xf32>
    %76 = arith.divf %74, %75 : vector<4x64xf32>
    %77 = vector.extract_strided_slice %76 {offsets = [0, 0], sizes = [4, 32], strides = [1, 1]} : vector<4x64xf32> to vector<4x32xf32>
    %78 = vector.extract_strided_slice %76 {offsets = [0, 32], sizes = [4, 32], strides = [1, 1]} : vector<4x64xf32> to vector<4x32xf32>
    %79 = vector.extract_strided_slice %65 {offsets = [0, 64], sizes = [4, 32], strides = [1, 1]} : vector<4x96xf32> to vector<4x32xf32>
    %80 = vector.extract_strided_slice %68 {offsets = [0, 64], sizes = [4, 32], strides = [1, 1]} : vector<4x96xf32> to vector<4x32xf32>
    %81 = arith.mulf %77, %80 : vector<4x32xf32>
    %82 = arith.addf %79, %81 : vector<4x32xf32>
    %83 = math.tanh %82 : vector<4x32xf32>
    %cst_26 = arith.constant 1.000000e+00 : f32
    %84 = vector.broadcast %cst_26 : f32 to vector<4x32xf32>
    %85 = arith.subf %84, %78 : vector<4x32xf32>
    %86 = arith.mulf %85, %83 : vector<4x32xf32>
    %87 = arith.mulf %78, %39 : vector<4x32xf32>
    %88 = arith.addf %86, %87 : vector<4x32xf32>
    %89 = arith.truncf %62 : vector<4x32xf32> to vector<4x32xbf16>
    %cst_27 = arith.constant dense<0.000000e+00> : vector<4x96xf32>
    %90 = tpu.matmul %89, %2, %cst_27 {dimension_numbers = #tpu.dot_dimension_numbers<[1], [0], [0], [1], [0, 0, 1, 1], [], []>} : vector<4x32xbf16>, vector<32x96xbf16>, vector<4x96xf32> -> vector<4x96xf32>
    %91 = arith.addf %90, %6 : vector<4x96xf32>
    %92 = vector.extract_strided_slice %25 {offsets = [0, 0], sizes = [4, 64], strides = [1, 1]} : vector<4x96xf32> to vector<4x64xf32>
    %93 = vector.extract_strided_slice %91 {offsets = [0, 0], sizes = [4, 64], strides = [1, 1]} : vector<4x96xf32> to vector<4x64xf32>
    %94 = arith.addf %92, %93 : vector<4x64xf32>
    %95 = arith.negf %94 : vector<4x64xf32>
    %96 = math.exp %95 : vector<4x64xf32>
    %cst_28 = arith.constant 1.000000e+00 : f32
    %97 = vector.broadcast %cst_28 : f32 to vector<4x64xf32>
    %98 = arith.addf %97, %96 : vector<4x64xf32>
    %99 = arith.divf %97, %98 : vector<4x64xf32>
    %100 = vector.extract_strided_slice %99 {offsets = [0, 0], sizes = [4, 32], strides = [1, 1]} : vector<4x64xf32> to vector<4x32xf32>
    %101 = vector.extract_strided_slice %99 {offsets = [0, 32], sizes = [4, 32], strides = [1, 1]} : vector<4x64xf32> to vector<4x32xf32>
    %102 = vector.extract_strided_slice %25 {offsets = [0, 64], sizes = [4, 32], strides = [1, 1]} : vector<4x96xf32> to vector<4x32xf32>
    %103 = vector.extract_strided_slice %91 {offsets = [0, 64], sizes = [4, 32], strides = [1, 1]} : vector<4x96xf32> to vector<4x32xf32>
    %104 = arith.mulf %100, %103 : vector<4x32xf32>
    %105 = arith.addf %102, %104 : vector<4x32xf32>
    %106 = math.tanh %105 : vector<4x32xf32>
    %cst_29 = arith.constant 1.000000e+00 : f32
    %107 = vector.broadcast %cst_29 : f32 to vector<4x32xf32>
    %108 = arith.subf %107, %101 : vector<4x32xf32>
    %109 = arith.mulf %108, %106 : vector<4x32xf32>
    %110 = arith.mulf %101, %62 : vector<4x32xf32>
    %111 = arith.addf %109, %110 : vector<4x32xf32>
    %112 = arith.truncf %111 : vector<4x32xf32> to vector<4x32xbf16>
    %cst_30 = arith.constant dense<0.000000e+00> : vector<4x96xf32>
    %113 = tpu.matmul %112, %1, %cst_30 {dimension_numbers = #tpu.dot_dimension_numbers<[1], [0], [0], [1], [0, 0, 1, 1], [], []>} : vector<4x32xbf16>, vector<32x96xbf16>, vector<4x96xf32> -> vector<4x96xf32>
    %114 = arith.addf %113, %12 : vector<4x96xf32>
    %115 = arith.truncf %88 : vector<4x32xf32> to vector<4x32xbf16>
    %cst_31 = arith.constant dense<0.000000e+00> : vector<4x96xf32>
    %116 = tpu.matmul %115, %3, %cst_31 {dimension_numbers = #tpu.dot_dimension_numbers<[1], [0], [0], [1], [0, 0, 1, 1], [], []>} : vector<4x32xbf16>, vector<32x96xbf16>, vector<4x96xf32> -> vector<4x96xf32>
    %117 = arith.addf %116, %9 : vector<4x96xf32>
    %118 = vector.extract_strided_slice %114 {offsets = [0, 0], sizes = [4, 64], strides = [1, 1]} : vector<4x96xf32> to vector<4x64xf32>
    %119 = vector.extract_strided_slice %117 {offsets = [0, 0], sizes = [4, 64], strides = [1, 1]} : vector<4x96xf32> to vector<4x64xf32>
    %120 = arith.addf %118, %119 : vector<4x64xf32>
    %121 = arith.negf %120 : vector<4x64xf32>
    %122 = math.exp %121 : vector<4x64xf32>
    %cst_32 = arith.constant 1.000000e+00 : f32
    %123 = vector.broadcast %cst_32 : f32 to vector<4x64xf32>
    %124 = arith.addf %123, %122 : vector<4x64xf32>
    %125 = arith.divf %123, %124 : vector<4x64xf32>
    %126 = vector.extract_strided_slice %125 {offsets = [0, 0], sizes = [4, 32], strides = [1, 1]} : vector<4x64xf32> to vector<4x32xf32>
    %127 = vector.extract_strided_slice %125 {offsets = [0, 32], sizes = [4, 32], strides = [1, 1]} : vector<4x64xf32> to vector<4x32xf32>
    %128 = vector.extract_strided_slice %114 {offsets = [0, 64], sizes = [4, 32], strides = [1, 1]} : vector<4x96xf32> to vector<4x32xf32>
    %129 = vector.extract_strided_slice %117 {offsets = [0, 64], sizes = [4, 32], strides = [1, 1]} : vector<4x96xf32> to vector<4x32xf32>
    %130 = arith.mulf %126, %129 : vector<4x32xf32>
    %131 = arith.addf %128, %130 : vector<4x32xf32>
    %132 = math.tanh %131 : vector<4x32xf32>
    %cst_33 = arith.constant 1.000000e+00 : f32
    %133 = vector.broadcast %cst_33 : f32 to vector<4x32xf32>
    %134 = arith.subf %133, %127 : vector<4x32xf32>
    %135 = arith.mulf %134, %132 : vector<4x32xf32>
    %136 = arith.mulf %127, %88 : vector<4x32xf32>
    %137 = arith.addf %135, %136 : vector<4x32xf32>
    %138 = arith.truncf %111 : vector<4x32xf32> to vector<4x32xbf16>
    %cst_34 = arith.constant dense<0.000000e+00> : vector<4x96xf32>
    %139 = tpu.matmul %138, %2, %cst_34 {dimension_numbers = #tpu.dot_dimension_numbers<[1], [0], [0], [1], [0, 0, 1, 1], [], []>} : vector<4x32xbf16>, vector<32x96xbf16>, vector<4x96xf32> -> vector<4x96xf32>
    %140 = arith.addf %139, %6 : vector<4x96xf32>
    %141 = vector.extract_strided_slice %27 {offsets = [0, 0], sizes = [4, 64], strides = [1, 1]} : vector<4x96xf32> to vector<4x64xf32>
    %142 = vector.extract_strided_slice %140 {offsets = [0, 0], sizes = [4, 64], strides = [1, 1]} : vector<4x96xf32> to vector<4x64xf32>
    %143 = arith.addf %141, %142 : vector<4x64xf32>
    %144 = arith.negf %143 : vector<4x64xf32>
    %145 = math.exp %144 : vector<4x64xf32>
    %cst_35 = arith.constant 1.000000e+00 : f32
    %146 = vector.broadcast %cst_35 : f32 to vector<4x64xf32>
    %147 = arith.addf %146, %145 : vector<4x64xf32>
    %148 = arith.divf %146, %147 : vector<4x64xf32>
    %149 = vector.extract_strided_slice %148 {offsets = [0, 0], sizes = [4, 32], strides = [1, 1]} : vector<4x64xf32> to vector<4x32xf32>
    %150 = vector.extract_strided_slice %148 {offsets = [0, 32], sizes = [4, 32], strides = [1, 1]} : vector<4x64xf32> to vector<4x32xf32>
    %151 = vector.extract_strided_slice %27 {offsets = [0, 64], sizes = [4, 32], strides = [1, 1]} : vector<4x96xf32> to vector<4x32xf32>
    %152 = vector.extract_strided_slice %140 {offsets = [0, 64], sizes = [4, 32], strides = [1, 1]} : vector<4x96xf32> to vector<4x32xf32>
    %153 = arith.mulf %149, %152 : vector<4x32xf32>
    %154 = arith.addf %151, %153 : vector<4x32xf32>
    %155 = math.tanh %154 : vector<4x32xf32>
    %cst_36 = arith.constant 1.000000e+00 : f32
    %156 = vector.broadcast %cst_36 : f32 to vector<4x32xf32>
    %157 = arith.subf %156, %150 : vector<4x32xf32>
    %158 = arith.mulf %157, %155 : vector<4x32xf32>
    %159 = arith.mulf %150, %111 : vector<4x32xf32>
    %160 = arith.addf %158, %159 : vector<4x32xf32>
    %161 = arith.truncf %160 : vector<4x32xf32> to vector<4x32xbf16>
    %cst_37 = arith.constant dense<0.000000e+00> : vector<4x96xf32>
    %162 = tpu.matmul %161, %1, %cst_37 {dimension_numbers = #tpu.dot_dimension_numbers<[1], [0], [0], [1], [0, 0, 1, 1], [], []>} : vector<4x32xbf16>, vector<32x96xbf16>, vector<4x96xf32> -> vector<4x96xf32>
    %163 = arith.addf %162, %12 : vector<4x96xf32>
    %164 = arith.truncf %137 : vector<4x32xf32> to vector<4x32xbf16>
    %cst_38 = arith.constant dense<0.000000e+00> : vector<4x96xf32>
    %165 = tpu.matmul %164, %3, %cst_38 {dimension_numbers = #tpu.dot_dimension_numbers<[1], [0], [0], [1], [0, 0, 1, 1], [], []>} : vector<4x32xbf16>, vector<32x96xbf16>, vector<4x96xf32> -> vector<4x96xf32>
    %166 = arith.addf %165, %9 : vector<4x96xf32>
    %167 = vector.extract_strided_slice %163 {offsets = [0, 0], sizes = [4, 64], strides = [1, 1]} : vector<4x96xf32> to vector<4x64xf32>
    %168 = vector.extract_strided_slice %166 {offsets = [0, 0], sizes = [4, 64], strides = [1, 1]} : vector<4x96xf32> to vector<4x64xf32>
    %169 = arith.addf %167, %168 : vector<4x64xf32>
    %170 = arith.negf %169 : vector<4x64xf32>
    %171 = math.exp %170 : vector<4x64xf32>
    %cst_39 = arith.constant 1.000000e+00 : f32
    %172 = vector.broadcast %cst_39 : f32 to vector<4x64xf32>
    %173 = arith.addf %172, %171 : vector<4x64xf32>
    %174 = arith.divf %172, %173 : vector<4x64xf32>
    %175 = vector.extract_strided_slice %174 {offsets = [0, 0], sizes = [4, 32], strides = [1, 1]} : vector<4x64xf32> to vector<4x32xf32>
    %176 = vector.extract_strided_slice %174 {offsets = [0, 32], sizes = [4, 32], strides = [1, 1]} : vector<4x64xf32> to vector<4x32xf32>
    %177 = vector.extract_strided_slice %163 {offsets = [0, 64], sizes = [4, 32], strides = [1, 1]} : vector<4x96xf32> to vector<4x32xf32>
    %178 = vector.extract_strided_slice %166 {offsets = [0, 64], sizes = [4, 32], strides = [1, 1]} : vector<4x96xf32> to vector<4x32xf32>
    %179 = arith.mulf %175, %178 : vector<4x32xf32>
    %180 = arith.addf %177, %179 : vector<4x32xf32>
    %181 = math.tanh %180 : vector<4x32xf32>
    %cst_40 = arith.constant 1.000000e+00 : f32
    %182 = vector.broadcast %cst_40 : f32 to vector<4x32xf32>
    %183 = arith.subf %182, %176 : vector<4x32xf32>
    %184 = arith.mulf %183, %181 : vector<4x32xf32>
    %185 = arith.mulf %176, %137 : vector<4x32xf32>
    %186 = arith.addf %184, %185 : vector<4x32xf32>
    %187 = arith.truncf %160 : vector<4x32xf32> to vector<4x32xbf16>
    %cst_41 = arith.constant dense<0.000000e+00> : vector<4x96xf32>
    %188 = tpu.matmul %187, %2, %cst_41 {dimension_numbers = #tpu.dot_dimension_numbers<[1], [0], [0], [1], [0, 0, 1, 1], [], []>} : vector<4x32xbf16>, vector<32x96xbf16>, vector<4x96xf32> -> vector<4x96xf32>
    %189 = arith.addf %188, %6 : vector<4x96xf32>
    %190 = vector.extract_strided_slice %29 {offsets = [0, 0], sizes = [4, 64], strides = [1, 1]} : vector<4x96xf32> to vector<4x64xf32>
    %191 = vector.extract_strided_slice %189 {offsets = [0, 0], sizes = [4, 64], strides = [1, 1]} : vector<4x96xf32> to vector<4x64xf32>
    %192 = arith.addf %190, %191 : vector<4x64xf32>
    %193 = arith.negf %192 : vector<4x64xf32>
    %194 = math.exp %193 : vector<4x64xf32>
    %cst_42 = arith.constant 1.000000e+00 : f32
    %195 = vector.broadcast %cst_42 : f32 to vector<4x64xf32>
    %196 = arith.addf %195, %194 : vector<4x64xf32>
    %197 = arith.divf %195, %196 : vector<4x64xf32>
    %198 = vector.extract_strided_slice %197 {offsets = [0, 0], sizes = [4, 32], strides = [1, 1]} : vector<4x64xf32> to vector<4x32xf32>
    %199 = vector.extract_strided_slice %197 {offsets = [0, 32], sizes = [4, 32], strides = [1, 1]} : vector<4x64xf32> to vector<4x32xf32>
    %200 = vector.extract_strided_slice %29 {offsets = [0, 64], sizes = [4, 32], strides = [1, 1]} : vector<4x96xf32> to vector<4x32xf32>
    %201 = vector.extract_strided_slice %189 {offsets = [0, 64], sizes = [4, 32], strides = [1, 1]} : vector<4x96xf32> to vector<4x32xf32>
    %202 = arith.mulf %198, %201 : vector<4x32xf32>
    %203 = arith.addf %200, %202 : vector<4x32xf32>
    %204 = math.tanh %203 : vector<4x32xf32>
    %cst_43 = arith.constant 1.000000e+00 : f32
    %205 = vector.broadcast %cst_43 : f32 to vector<4x32xf32>
    %206 = arith.subf %205, %199 : vector<4x32xf32>
    %207 = arith.mulf %206, %204 : vector<4x32xf32>
    %208 = arith.mulf %199, %160 : vector<4x32xf32>
    %209 = arith.addf %207, %208 : vector<4x32xf32>
    %210 = arith.truncf %209 : vector<4x32xf32> to vector<4x32xbf16>
    %cst_44 = arith.constant dense<0.000000e+00> : vector<4x96xf32>
    %211 = tpu.matmul %210, %1, %cst_44 {dimension_numbers = #tpu.dot_dimension_numbers<[1], [0], [0], [1], [0, 0, 1, 1], [], []>} : vector<4x32xbf16>, vector<32x96xbf16>, vector<4x96xf32> -> vector<4x96xf32>
    %212 = arith.addf %211, %12 : vector<4x96xf32>
    %213 = arith.truncf %186 : vector<4x32xf32> to vector<4x32xbf16>
    %cst_45 = arith.constant dense<0.000000e+00> : vector<4x96xf32>
    %214 = tpu.matmul %213, %3, %cst_45 {dimension_numbers = #tpu.dot_dimension_numbers<[1], [0], [0], [1], [0, 0, 1, 1], [], []>} : vector<4x32xbf16>, vector<32x96xbf16>, vector<4x96xf32> -> vector<4x96xf32>
    %215 = arith.addf %214, %9 : vector<4x96xf32>
    %216 = vector.extract_strided_slice %212 {offsets = [0, 0], sizes = [4, 64], strides = [1, 1]} : vector<4x96xf32> to vector<4x64xf32>
    %217 = vector.extract_strided_slice %215 {offsets = [0, 0], sizes = [4, 64], strides = [1, 1]} : vector<4x96xf32> to vector<4x64xf32>
    %218 = arith.addf %216, %217 : vector<4x64xf32>
    %219 = arith.negf %218 : vector<4x64xf32>
    %220 = math.exp %219 : vector<4x64xf32>
    %cst_46 = arith.constant 1.000000e+00 : f32
    %221 = vector.broadcast %cst_46 : f32 to vector<4x64xf32>
    %222 = arith.addf %221, %220 : vector<4x64xf32>
    %223 = arith.divf %221, %222 : vector<4x64xf32>
    %224 = vector.extract_strided_slice %223 {offsets = [0, 0], sizes = [4, 32], strides = [1, 1]} : vector<4x64xf32> to vector<4x32xf32>
    %225 = vector.extract_strided_slice %223 {offsets = [0, 32], sizes = [4, 32], strides = [1, 1]} : vector<4x64xf32> to vector<4x32xf32>
    %226 = vector.extract_strided_slice %212 {offsets = [0, 64], sizes = [4, 32], strides = [1, 1]} : vector<4x96xf32> to vector<4x32xf32>
    %227 = vector.extract_strided_slice %215 {offsets = [0, 64], sizes = [4, 32], strides = [1, 1]} : vector<4x96xf32> to vector<4x32xf32>
    %228 = arith.mulf %224, %227 : vector<4x32xf32>
    %229 = arith.addf %226, %228 : vector<4x32xf32>
    %230 = math.tanh %229 : vector<4x32xf32>
    %cst_47 = arith.constant 1.000000e+00 : f32
    %231 = vector.broadcast %cst_47 : f32 to vector<4x32xf32>
    %232 = arith.subf %231, %225 : vector<4x32xf32>
    %233 = arith.mulf %232, %230 : vector<4x32xf32>
    %234 = arith.mulf %225, %186 : vector<4x32xf32>
    %235 = arith.addf %233, %234 : vector<4x32xf32>
    %236 = arith.truncf %209 : vector<4x32xf32> to vector<4x32xbf16>
    %cst_48 = arith.constant dense<0.000000e+00> : vector<4x96xf32>
    %237 = tpu.matmul %236, %2, %cst_48 {dimension_numbers = #tpu.dot_dimension_numbers<[1], [0], [0], [1], [0, 0, 1, 1], [], []>} : vector<4x32xbf16>, vector<32x96xbf16>, vector<4x96xf32> -> vector<4x96xf32>
    %238 = arith.addf %237, %6 : vector<4x96xf32>
    %239 = vector.extract_strided_slice %31 {offsets = [0, 0], sizes = [4, 64], strides = [1, 1]} : vector<4x96xf32> to vector<4x64xf32>
    %240 = vector.extract_strided_slice %238 {offsets = [0, 0], sizes = [4, 64], strides = [1, 1]} : vector<4x96xf32> to vector<4x64xf32>
    %241 = arith.addf %239, %240 : vector<4x64xf32>
    %242 = arith.negf %241 : vector<4x64xf32>
    %243 = math.exp %242 : vector<4x64xf32>
    %cst_49 = arith.constant 1.000000e+00 : f32
    %244 = vector.broadcast %cst_49 : f32 to vector<4x64xf32>
    %245 = arith.addf %244, %243 : vector<4x64xf32>
    %246 = arith.divf %244, %245 : vector<4x64xf32>
    %247 = vector.extract_strided_slice %246 {offsets = [0, 0], sizes = [4, 32], strides = [1, 1]} : vector<4x64xf32> to vector<4x32xf32>
    %248 = vector.extract_strided_slice %246 {offsets = [0, 32], sizes = [4, 32], strides = [1, 1]} : vector<4x64xf32> to vector<4x32xf32>
    %249 = vector.extract_strided_slice %31 {offsets = [0, 64], sizes = [4, 32], strides = [1, 1]} : vector<4x96xf32> to vector<4x32xf32>
    %250 = vector.extract_strided_slice %238 {offsets = [0, 64], sizes = [4, 32], strides = [1, 1]} : vector<4x96xf32> to vector<4x32xf32>
    %251 = arith.mulf %247, %250 : vector<4x32xf32>
    %252 = arith.addf %249, %251 : vector<4x32xf32>
    %253 = math.tanh %252 : vector<4x32xf32>
    %cst_50 = arith.constant 1.000000e+00 : f32
    %254 = vector.broadcast %cst_50 : f32 to vector<4x32xf32>
    %255 = arith.subf %254, %248 : vector<4x32xf32>
    %256 = arith.mulf %255, %253 : vector<4x32xf32>
    %257 = arith.mulf %248, %209 : vector<4x32xf32>
    %258 = arith.addf %256, %257 : vector<4x32xf32>
    %259 = arith.truncf %258 : vector<4x32xf32> to vector<4x32xbf16>
    %cst_51 = arith.constant dense<0.000000e+00> : vector<4x96xf32>
    %260 = tpu.matmul %259, %1, %cst_51 {dimension_numbers = #tpu.dot_dimension_numbers<[1], [0], [0], [1], [0, 0, 1, 1], [], []>} : vector<4x32xbf16>, vector<32x96xbf16>, vector<4x96xf32> -> vector<4x96xf32>
    %261 = arith.addf %260, %12 : vector<4x96xf32>
    %262 = arith.truncf %235 : vector<4x32xf32> to vector<4x32xbf16>
    %cst_52 = arith.constant dense<0.000000e+00> : vector<4x96xf32>
    %263 = tpu.matmul %262, %3, %cst_52 {dimension_numbers = #tpu.dot_dimension_numbers<[1], [0], [0], [1], [0, 0, 1, 1], [], []>} : vector<4x32xbf16>, vector<32x96xbf16>, vector<4x96xf32> -> vector<4x96xf32>
    %264 = arith.addf %263, %9 : vector<4x96xf32>
    %265 = vector.extract_strided_slice %261 {offsets = [0, 0], sizes = [4, 64], strides = [1, 1]} : vector<4x96xf32> to vector<4x64xf32>
    %266 = vector.extract_strided_slice %264 {offsets = [0, 0], sizes = [4, 64], strides = [1, 1]} : vector<4x96xf32> to vector<4x64xf32>
    %267 = arith.addf %265, %266 : vector<4x64xf32>
    %268 = arith.negf %267 : vector<4x64xf32>
    %269 = math.exp %268 : vector<4x64xf32>
    %cst_53 = arith.constant 1.000000e+00 : f32
    %270 = vector.broadcast %cst_53 : f32 to vector<4x64xf32>
    %271 = arith.addf %270, %269 : vector<4x64xf32>
    %272 = arith.divf %270, %271 : vector<4x64xf32>
    %273 = vector.extract_strided_slice %272 {offsets = [0, 0], sizes = [4, 32], strides = [1, 1]} : vector<4x64xf32> to vector<4x32xf32>
    %274 = vector.extract_strided_slice %272 {offsets = [0, 32], sizes = [4, 32], strides = [1, 1]} : vector<4x64xf32> to vector<4x32xf32>
    %275 = vector.extract_strided_slice %261 {offsets = [0, 64], sizes = [4, 32], strides = [1, 1]} : vector<4x96xf32> to vector<4x32xf32>
    %276 = vector.extract_strided_slice %264 {offsets = [0, 64], sizes = [4, 32], strides = [1, 1]} : vector<4x96xf32> to vector<4x32xf32>
    %277 = arith.mulf %273, %276 : vector<4x32xf32>
    %278 = arith.addf %275, %277 : vector<4x32xf32>
    %279 = math.tanh %278 : vector<4x32xf32>
    %cst_54 = arith.constant 1.000000e+00 : f32
    %280 = vector.broadcast %cst_54 : f32 to vector<4x32xf32>
    %281 = arith.subf %280, %274 : vector<4x32xf32>
    %282 = arith.mulf %281, %279 : vector<4x32xf32>
    %283 = arith.mulf %274, %235 : vector<4x32xf32>
    %284 = arith.addf %282, %283 : vector<4x32xf32>
    %285 = arith.truncf %258 : vector<4x32xf32> to vector<4x32xbf16>
    %cst_55 = arith.constant dense<0.000000e+00> : vector<4x96xf32>
    %286 = tpu.matmul %285, %2, %cst_55 {dimension_numbers = #tpu.dot_dimension_numbers<[1], [0], [0], [1], [0, 0, 1, 1], [], []>} : vector<4x32xbf16>, vector<32x96xbf16>, vector<4x96xf32> -> vector<4x96xf32>
    %287 = arith.addf %286, %6 : vector<4x96xf32>
    %288 = vector.extract_strided_slice %33 {offsets = [0, 0], sizes = [4, 64], strides = [1, 1]} : vector<4x96xf32> to vector<4x64xf32>
    %289 = vector.extract_strided_slice %287 {offsets = [0, 0], sizes = [4, 64], strides = [1, 1]} : vector<4x96xf32> to vector<4x64xf32>
    %290 = arith.addf %288, %289 : vector<4x64xf32>
    %291 = arith.negf %290 : vector<4x64xf32>
    %292 = math.exp %291 : vector<4x64xf32>
    %cst_56 = arith.constant 1.000000e+00 : f32
    %293 = vector.broadcast %cst_56 : f32 to vector<4x64xf32>
    %294 = arith.addf %293, %292 : vector<4x64xf32>
    %295 = arith.divf %293, %294 : vector<4x64xf32>
    %296 = vector.extract_strided_slice %295 {offsets = [0, 0], sizes = [4, 32], strides = [1, 1]} : vector<4x64xf32> to vector<4x32xf32>
    %297 = vector.extract_strided_slice %295 {offsets = [0, 32], sizes = [4, 32], strides = [1, 1]} : vector<4x64xf32> to vector<4x32xf32>
    %298 = vector.extract_strided_slice %33 {offsets = [0, 64], sizes = [4, 32], strides = [1, 1]} : vector<4x96xf32> to vector<4x32xf32>
    %299 = vector.extract_strided_slice %287 {offsets = [0, 64], sizes = [4, 32], strides = [1, 1]} : vector<4x96xf32> to vector<4x32xf32>
    %300 = arith.mulf %296, %299 : vector<4x32xf32>
    %301 = arith.addf %298, %300 : vector<4x32xf32>
    %302 = math.tanh %301 : vector<4x32xf32>
    %cst_57 = arith.constant 1.000000e+00 : f32
    %303 = vector.broadcast %cst_57 : f32 to vector<4x32xf32>
    %304 = arith.subf %303, %297 : vector<4x32xf32>
    %305 = arith.mulf %304, %302 : vector<4x32xf32>
    %306 = arith.mulf %297, %258 : vector<4x32xf32>
    %307 = arith.addf %305, %306 : vector<4x32xf32>
    %308 = arith.truncf %307 : vector<4x32xf32> to vector<4x32xbf16>
    %cst_58 = arith.constant dense<0.000000e+00> : vector<4x96xf32>
    %309 = tpu.matmul %308, %1, %cst_58 {dimension_numbers = #tpu.dot_dimension_numbers<[1], [0], [0], [1], [0, 0, 1, 1], [], []>} : vector<4x32xbf16>, vector<32x96xbf16>, vector<4x96xf32> -> vector<4x96xf32>
    %310 = arith.addf %309, %12 : vector<4x96xf32>
    %311 = arith.truncf %284 : vector<4x32xf32> to vector<4x32xbf16>
    %cst_59 = arith.constant dense<0.000000e+00> : vector<4x96xf32>
    %312 = tpu.matmul %311, %3, %cst_59 {dimension_numbers = #tpu.dot_dimension_numbers<[1], [0], [0], [1], [0, 0, 1, 1], [], []>} : vector<4x32xbf16>, vector<32x96xbf16>, vector<4x96xf32> -> vector<4x96xf32>
    %313 = arith.addf %312, %9 : vector<4x96xf32>
    %314 = vector.extract_strided_slice %310 {offsets = [0, 0], sizes = [4, 64], strides = [1, 1]} : vector<4x96xf32> to vector<4x64xf32>
    %315 = vector.extract_strided_slice %313 {offsets = [0, 0], sizes = [4, 64], strides = [1, 1]} : vector<4x96xf32> to vector<4x64xf32>
    %316 = arith.addf %314, %315 : vector<4x64xf32>
    %317 = arith.negf %316 : vector<4x64xf32>
    %318 = math.exp %317 : vector<4x64xf32>
    %cst_60 = arith.constant 1.000000e+00 : f32
    %319 = vector.broadcast %cst_60 : f32 to vector<4x64xf32>
    %320 = arith.addf %319, %318 : vector<4x64xf32>
    %321 = arith.divf %319, %320 : vector<4x64xf32>
    %322 = vector.extract_strided_slice %321 {offsets = [0, 0], sizes = [4, 32], strides = [1, 1]} : vector<4x64xf32> to vector<4x32xf32>
    %323 = vector.extract_strided_slice %321 {offsets = [0, 32], sizes = [4, 32], strides = [1, 1]} : vector<4x64xf32> to vector<4x32xf32>
    %324 = vector.extract_strided_slice %310 {offsets = [0, 64], sizes = [4, 32], strides = [1, 1]} : vector<4x96xf32> to vector<4x32xf32>
    %325 = vector.extract_strided_slice %313 {offsets = [0, 64], sizes = [4, 32], strides = [1, 1]} : vector<4x96xf32> to vector<4x32xf32>
    %326 = arith.mulf %322, %325 : vector<4x32xf32>
    %327 = arith.addf %324, %326 : vector<4x32xf32>
    %328 = math.tanh %327 : vector<4x32xf32>
    %cst_61 = arith.constant 1.000000e+00 : f32
    %329 = vector.broadcast %cst_61 : f32 to vector<4x32xf32>
    %330 = arith.subf %329, %323 : vector<4x32xf32>
    %331 = arith.mulf %330, %328 : vector<4x32xf32>
    %332 = arith.mulf %323, %284 : vector<4x32xf32>
    %333 = arith.addf %331, %332 : vector<4x32xf32>
    %334 = arith.truncf %307 : vector<4x32xf32> to vector<4x32xbf16>
    %cst_62 = arith.constant dense<0.000000e+00> : vector<4x96xf32>
    %335 = tpu.matmul %334, %2, %cst_62 {dimension_numbers = #tpu.dot_dimension_numbers<[1], [0], [0], [1], [0, 0, 1, 1], [], []>} : vector<4x32xbf16>, vector<32x96xbf16>, vector<4x96xf32> -> vector<4x96xf32>
    %336 = arith.addf %335, %6 : vector<4x96xf32>
    %337 = vector.extract_strided_slice %35 {offsets = [0, 0], sizes = [4, 64], strides = [1, 1]} : vector<4x96xf32> to vector<4x64xf32>
    %338 = vector.extract_strided_slice %336 {offsets = [0, 0], sizes = [4, 64], strides = [1, 1]} : vector<4x96xf32> to vector<4x64xf32>
    %339 = arith.addf %337, %338 : vector<4x64xf32>
    %340 = arith.negf %339 : vector<4x64xf32>
    %341 = math.exp %340 : vector<4x64xf32>
    %cst_63 = arith.constant 1.000000e+00 : f32
    %342 = vector.broadcast %cst_63 : f32 to vector<4x64xf32>
    %343 = arith.addf %342, %341 : vector<4x64xf32>
    %344 = arith.divf %342, %343 : vector<4x64xf32>
    %345 = vector.extract_strided_slice %344 {offsets = [0, 0], sizes = [4, 32], strides = [1, 1]} : vector<4x64xf32> to vector<4x32xf32>
    %346 = vector.extract_strided_slice %344 {offsets = [0, 32], sizes = [4, 32], strides = [1, 1]} : vector<4x64xf32> to vector<4x32xf32>
    %347 = vector.extract_strided_slice %35 {offsets = [0, 64], sizes = [4, 32], strides = [1, 1]} : vector<4x96xf32> to vector<4x32xf32>
    %348 = vector.extract_strided_slice %336 {offsets = [0, 64], sizes = [4, 32], strides = [1, 1]} : vector<4x96xf32> to vector<4x32xf32>
    %349 = arith.mulf %345, %348 : vector<4x32xf32>
    %350 = arith.addf %347, %349 : vector<4x32xf32>
    %351 = math.tanh %350 : vector<4x32xf32>
    %cst_64 = arith.constant 1.000000e+00 : f32
    %352 = vector.broadcast %cst_64 : f32 to vector<4x32xf32>
    %353 = arith.subf %352, %346 : vector<4x32xf32>
    %354 = arith.mulf %353, %351 : vector<4x32xf32>
    %355 = arith.mulf %346, %307 : vector<4x32xf32>
    %356 = arith.addf %354, %355 : vector<4x32xf32>
    %357 = arith.truncf %356 : vector<4x32xf32> to vector<4x32xbf16>
    %cst_65 = arith.constant dense<0.000000e+00> : vector<4x96xf32>
    %358 = tpu.matmul %357, %1, %cst_65 {dimension_numbers = #tpu.dot_dimension_numbers<[1], [0], [0], [1], [0, 0, 1, 1], [], []>} : vector<4x32xbf16>, vector<32x96xbf16>, vector<4x96xf32> -> vector<4x96xf32>
    %359 = arith.addf %358, %12 : vector<4x96xf32>
    %360 = arith.truncf %333 : vector<4x32xf32> to vector<4x32xbf16>
    %cst_66 = arith.constant dense<0.000000e+00> : vector<4x96xf32>
    %361 = tpu.matmul %360, %3, %cst_66 {dimension_numbers = #tpu.dot_dimension_numbers<[1], [0], [0], [1], [0, 0, 1, 1], [], []>} : vector<4x32xbf16>, vector<32x96xbf16>, vector<4x96xf32> -> vector<4x96xf32>
    %362 = arith.addf %361, %9 : vector<4x96xf32>
    %363 = vector.extract_strided_slice %359 {offsets = [0, 0], sizes = [4, 64], strides = [1, 1]} : vector<4x96xf32> to vector<4x64xf32>
    %364 = vector.extract_strided_slice %362 {offsets = [0, 0], sizes = [4, 64], strides = [1, 1]} : vector<4x96xf32> to vector<4x64xf32>
    %365 = arith.addf %363, %364 : vector<4x64xf32>
    %366 = arith.negf %365 : vector<4x64xf32>
    %367 = math.exp %366 : vector<4x64xf32>
    %cst_67 = arith.constant 1.000000e+00 : f32
    %368 = vector.broadcast %cst_67 : f32 to vector<4x64xf32>
    %369 = arith.addf %368, %367 : vector<4x64xf32>
    %370 = arith.divf %368, %369 : vector<4x64xf32>
    %371 = vector.extract_strided_slice %370 {offsets = [0, 0], sizes = [4, 32], strides = [1, 1]} : vector<4x64xf32> to vector<4x32xf32>
    %372 = vector.extract_strided_slice %370 {offsets = [0, 32], sizes = [4, 32], strides = [1, 1]} : vector<4x64xf32> to vector<4x32xf32>
    %373 = vector.extract_strided_slice %359 {offsets = [0, 64], sizes = [4, 32], strides = [1, 1]} : vector<4x96xf32> to vector<4x32xf32>
    %374 = vector.extract_strided_slice %362 {offsets = [0, 64], sizes = [4, 32], strides = [1, 1]} : vector<4x96xf32> to vector<4x32xf32>
    %375 = arith.mulf %371, %374 : vector<4x32xf32>
    %376 = arith.addf %373, %375 : vector<4x32xf32>
    %377 = math.tanh %376 : vector<4x32xf32>
    %cst_68 = arith.constant 1.000000e+00 : f32
    %378 = vector.broadcast %cst_68 : f32 to vector<4x32xf32>
    %379 = arith.subf %378, %372 : vector<4x32xf32>
    %380 = arith.mulf %379, %377 : vector<4x32xf32>
    %381 = arith.mulf %372, %333 : vector<4x32xf32>
    %382 = arith.addf %380, %381 : vector<4x32xf32>
    %383 = arith.truncf %356 : vector<4x32xf32> to vector<4x32xbf16>
    %cst_69 = arith.constant dense<0.000000e+00> : vector<4x96xf32>
    %384 = tpu.matmul %383, %2, %cst_69 {dimension_numbers = #tpu.dot_dimension_numbers<[1], [0], [0], [1], [0, 0, 1, 1], [], []>} : vector<4x32xbf16>, vector<32x96xbf16>, vector<4x96xf32> -> vector<4x96xf32>
    %385 = arith.addf %384, %6 : vector<4x96xf32>
    %386 = vector.extract_strided_slice %37 {offsets = [0, 0], sizes = [4, 64], strides = [1, 1]} : vector<4x96xf32> to vector<4x64xf32>
    %387 = vector.extract_strided_slice %385 {offsets = [0, 0], sizes = [4, 64], strides = [1, 1]} : vector<4x96xf32> to vector<4x64xf32>
    %388 = arith.addf %386, %387 : vector<4x64xf32>
    %389 = arith.negf %388 : vector<4x64xf32>
    %390 = math.exp %389 : vector<4x64xf32>
    %cst_70 = arith.constant 1.000000e+00 : f32
    %391 = vector.broadcast %cst_70 : f32 to vector<4x64xf32>
    %392 = arith.addf %391, %390 : vector<4x64xf32>
    %393 = arith.divf %391, %392 : vector<4x64xf32>
    %394 = vector.extract_strided_slice %393 {offsets = [0, 0], sizes = [4, 32], strides = [1, 1]} : vector<4x64xf32> to vector<4x32xf32>
    %395 = vector.extract_strided_slice %393 {offsets = [0, 32], sizes = [4, 32], strides = [1, 1]} : vector<4x64xf32> to vector<4x32xf32>
    %396 = vector.extract_strided_slice %37 {offsets = [0, 64], sizes = [4, 32], strides = [1, 1]} : vector<4x96xf32> to vector<4x32xf32>
    %397 = vector.extract_strided_slice %385 {offsets = [0, 64], sizes = [4, 32], strides = [1, 1]} : vector<4x96xf32> to vector<4x32xf32>
    %398 = arith.mulf %394, %397 : vector<4x32xf32>
    %399 = arith.addf %396, %398 : vector<4x32xf32>
    %400 = math.tanh %399 : vector<4x32xf32>
    %cst_71 = arith.constant 1.000000e+00 : f32
    %401 = vector.broadcast %cst_71 : f32 to vector<4x32xf32>
    %402 = arith.subf %401, %395 : vector<4x32xf32>
    %403 = arith.mulf %402, %400 : vector<4x32xf32>
    %404 = arith.mulf %395, %356 : vector<4x32xf32>
    %405 = arith.addf %403, %404 : vector<4x32xf32>
    %406 = arith.truncf %405 : vector<4x32xf32> to vector<4x32xbf16>
    %cst_72 = arith.constant dense<0.000000e+00> : vector<4x96xf32>
    %407 = tpu.matmul %406, %1, %cst_72 {dimension_numbers = #tpu.dot_dimension_numbers<[1], [0], [0], [1], [0, 0, 1, 1], [], []>} : vector<4x32xbf16>, vector<32x96xbf16>, vector<4x96xf32> -> vector<4x96xf32>
    %408 = arith.addf %407, %12 : vector<4x96xf32>
    %409 = arith.truncf %382 : vector<4x32xf32> to vector<4x32xbf16>
    %cst_73 = arith.constant dense<0.000000e+00> : vector<4x96xf32>
    %410 = tpu.matmul %409, %3, %cst_73 {dimension_numbers = #tpu.dot_dimension_numbers<[1], [0], [0], [1], [0, 0, 1, 1], [], []>} : vector<4x32xbf16>, vector<32x96xbf16>, vector<4x96xf32> -> vector<4x96xf32>
    %411 = arith.addf %410, %9 : vector<4x96xf32>
    %412 = vector.extract_strided_slice %408 {offsets = [0, 0], sizes = [4, 64], strides = [1, 1]} : vector<4x96xf32> to vector<4x64xf32>
    %413 = vector.extract_strided_slice %411 {offsets = [0, 0], sizes = [4, 64], strides = [1, 1]} : vector<4x96xf32> to vector<4x64xf32>
    %414 = arith.addf %412, %413 : vector<4x64xf32>
    %415 = arith.negf %414 : vector<4x64xf32>
    %416 = math.exp %415 : vector<4x64xf32>
    %cst_74 = arith.constant 1.000000e+00 : f32
    %417 = vector.broadcast %cst_74 : f32 to vector<4x64xf32>
    %418 = arith.addf %417, %416 : vector<4x64xf32>
    %419 = arith.divf %417, %418 : vector<4x64xf32>
    %420 = vector.extract_strided_slice %419 {offsets = [0, 0], sizes = [4, 32], strides = [1, 1]} : vector<4x64xf32> to vector<4x32xf32>
    %421 = vector.extract_strided_slice %419 {offsets = [0, 32], sizes = [4, 32], strides = [1, 1]} : vector<4x64xf32> to vector<4x32xf32>
    %422 = vector.extract_strided_slice %408 {offsets = [0, 64], sizes = [4, 32], strides = [1, 1]} : vector<4x96xf32> to vector<4x32xf32>
    %423 = vector.extract_strided_slice %411 {offsets = [0, 64], sizes = [4, 32], strides = [1, 1]} : vector<4x96xf32> to vector<4x32xf32>
    %424 = arith.mulf %420, %423 : vector<4x32xf32>
    %425 = arith.addf %422, %424 : vector<4x32xf32>
    %426 = math.tanh %425 : vector<4x32xf32>
    %cst_75 = arith.constant 1.000000e+00 : f32
    %427 = vector.broadcast %cst_75 : f32 to vector<4x32xf32>
    %428 = arith.subf %427, %421 : vector<4x32xf32>
    %429 = arith.mulf %428, %426 : vector<4x32xf32>
    %430 = arith.mulf %421, %382 : vector<4x32xf32>
    %431 = arith.addf %429, %430 : vector<4x32xf32>
    %c0_76 = arith.constant 0 : index
    %c0_77 = arith.constant 0 : index
    %432 = vector.load %arg9[%c0_76, %c0_77] : memref<32x4xf32, #tpu.memory_space<vmem>>, vector<32x4xf32>
    %cst_78 = arith.constant dense<0.000000e+00> : vector<4x4xf32>
    %433 = tpu.matmul %431, %432, %cst_78 {dimension_numbers = #tpu.dot_dimension_numbers<[1], [0], [0], [1], [0, 0, 1, 1], [], []>} : vector<4x32xf32>, vector<32x4xf32>, vector<4x4xf32> -> vector<4x4xf32>
    %c0_79 = arith.constant 0 : index
    %c0_80 = arith.constant 0 : index
    %434 = vector.load %arg10[%c0_79, %c0_80] : memref<1x4xf32, #tpu.memory_space<vmem>>, vector<1x4xf32>
    %435 = vector.broadcast %434 : vector<1x4xf32> to vector<4x4xf32>
    %436 = arith.addf %433, %435 : vector<4x4xf32>
    %c0_81 = arith.constant 0 : index
    %c0_82 = arith.constant 0 : index
    %437 = vector.load %arg11[%c0_81, %c0_82] : memref<4x4xf32, #tpu.memory_space<vmem>>, vector<4x4xf32>
    tpu.vector_store %arg11[%c0_81, %c0_82], %436 {strides = array<i32>} : memref<4x4xf32, #tpu.memory_space<vmem>>, vector<4x4xf32>,
    return
  }
}

</mosaic_0001>

<bundles_post_ra>
// kernel: tpu_custom_call.1
= control target key start
LH: loop header
LB: loop body
LE: loop exit
PB: predicated region body
PF: predicated region fallthrough
CT: control target
= control target key end

     0   :  { %16 = vsyncpa [#allocation3], 0  ;;  %s4434_s0 = inlined_call_operand.vmem [shape: f32[4,8,8], index: 0, kind: input, shape index: {}]   ;;  %s4435_s1 = inlined_call_operand.hbm [shape: bf16[8,96], index: 1, kind: input, shape index: {}]   ;;  %s4436_s2 = inlined_call_operand.hbm [shape: f32[1,96], index: 2, kind: input, shape index: {}]   ;;  %s4437_s3 = inlined_call_operand.hbm [shape: bf16[32,96], index: 3, kind: input, shape index: {}]   ;;  %s4438_s4 = inlined_call_operand.hbm [shape: f32[1,96], index: 4, kind: input, shape index: {}]   ;;  %s4439_s5 = inlined_call_operand.hbm [shape: bf16[32,96], index: 5, kind: input, shape index: {}]   ;;  %s4440_s6 = inlined_call_operand.hbm [shape: f32[1,96], index: 6, kind: input, shape index: {}]   ;;  %s4441_s7 = inlined_call_operand.vmem [shape: bf16[32,96], index: 7, kind: input, shape index: {}]   ;;  %s4442_s8 = inlined_call_operand.hbm [shape: f32[1,96], index: 8, kind: input, shape index: {}]   ;;  %s4443_s9 = inlined_call_operand.vmem [shape: f32[32,4], index: 9, kind: input, shape index: {}]   ;;  %s4444_s10 = inlined_call_operand.vmem [shape: f32[1,4], index: 10, kind: input, shape index: {}]   ;;  %s4445_s11 = inlined_call_operand.hbm [shape: f32[4,4], index: 11, kind: output, shape index: {}]  }
   0x1   :  { %17 = vsyncpa [#allocation6], 0 }
   0x2   :  { %18 = vsyncpa [#allocation9], 0 }
   0x3   :  { %19 = vsyncpa [#allocation12], 0 }
   0x4   :  { %20 = vsyncpa [#allocation4], 0  ;;  %s3555_s17 = smov [#allocation5]   ;;  %s3556_s19 = smov [#allocation8]  }
   0x5   :  { %s39_s18 = sshll.u32 %s3555_s17, 4  ;;  %s61_s20 = sshll.u32 %s3556_s19, 4  ;;  %s40_s18 = int_to_ptr.vmem [resolvable:$true] %s39_s18  ;;  %s62_s20 = int_to_ptr.vmem [resolvable:$true] %s61_s20 }
   0x6   :  { %s3393_s21 = scalar_lea.vmem %s40_s18, 16  ;;  %s3397_s22 = scalar_lea.vmem %s40_s18, 32 }
   0x7   :  { %p3394_p0 = scmp.ne.s32.totalorder %s40_s18, %s3393_s21  ;;  %p3398_p1 = scmp.lt.s32.totalorder %s40_s18, %s40_s18 }
   0x8   :  { %p3399_p2 = scmp.lt.s32.totalorder %s3397_s22, %s3393_s21 }
   0xa   :  { %p3400_p3 = por %p3399_p2, %p3398_p1 }
   0xc   :  { %p3401_p4 = pnand %p3400_p3, %p3394_p0 }
   0xe   :  { %3404 = shalt.err (!%p3401_p4)
}
   0xf   :  { %42 = dma.hbm_to_vmem [thread:$0]  %s4436_s2, 16, %s40_s18, [#allocation6]  }
  0x10   :  { %s3413_s25 = scalar_lea.vmem %s62_s20, 16  ;;  %s3417_s26 = scalar_lea.vmem %s62_s20, 32 }
  0x11   :  { %p3414_p5 = scmp.ne.s32.totalorder %s62_s20, %s3413_s25  ;;  %p3418_p6 = scmp.lt.s32.totalorder %s62_s20, %s62_s20 }
  0x12   :  { %p3419_p7 = scmp.lt.s32.totalorder %s3417_s26, %s3413_s25 }
  0x14   :  { %p3420_p8 = por %p3419_p7, %p3418_p6 }
  0x16   :  { %p3421_p9 = pnand %p3420_p8, %p3414_p5 }
  0x18   :  { %3424 = shalt.err (!%p3421_p9)
}
  0x19   :  { %64 = dma.hbm_to_vmem [thread:$0]  %s4438_s4, 16, %s62_s20, [#allocation9]  }
  0x1a   :  { %s3557_s29 = smov [#allocation11]   ;;  %s3558_s12 = smov [#allocation2]  }
  0x1b   :  { %s83_s30 = sshll.u32 %s3557_s29, 4  ;;  %s29_s13 = sshll.u32 %s3558_s12, 4  ;;  %s84_s30 = int_to_ptr.vmem [resolvable:$true] %s83_s30  ;;  %s30_s13 = int_to_ptr.vmem [resolvable:$true] %s29_s13 }
  0x1c   :  { %s3433_s14 = scalar_lea.vmem %s84_s30, 16  ;;  %s3437_s2 = scalar_lea.vmem %s84_s30, 32 }
  0x1d   :  { %p3434_p10 = scmp.ne.s32.totalorder %s84_s30, %s3433_s14  ;;  %p3438_p11 = scmp.lt.s32.totalorder %s84_s30, %s84_s30 }
  0x1e   :  { %p3439_p12 = scmp.lt.s32.totalorder %s3437_s2, %s3433_s14 }
  0x20   :  { %p3440_p13 = por %p3439_p12, %p3438_p11 }
  0x22   :  { %p3441_p0 = pnand %p3440_p13, %p3434_p10 }
  0x24   :  { %3444 = shalt.err (!%p3441_p0)
}
  0x25   :  { %86 = dma.hbm_to_vmem [thread:$0]  %s4440_s6, 16, %s84_s30, [#allocation12]  }
  0x26   :  { %s3453_s17 = scalar_lea.vmem %s30_s13, 64  ;;  %p3458_p2 = scmp.lt.s32.totalorder %s30_s13, %s30_s13 }
  0x27   :  { %p3454_p1 = scmp.ne.s32.totalorder %s30_s13, %s3453_s17  ;;  %p3459_p3 = scmp.lt.s32.totalorder %s3453_s17, %s3453_s17 }
  0x29   :  { %p3460_p4 = por %p3459_p3, %p3458_p2 }
  0x2b   :  { %p3461_p5 = pnand %p3460_p4, %p3454_p1 }
  0x2d   :  { %3464 = shalt.err (!%p3461_p5)
}
  0x2e   :  { %32 = dma.hbm_to_vmem [thread:$0]  %s4435_s1, 64, %s30_s13, [#allocation3]  }
  0x2f   :  { %s3559_s19 = smov [#allocation7]  }
  0x30   :  { %s48_s20 = sshll.u32 %s3559_s19, 4  ;;  %s49_s20 = int_to_ptr.vmem [resolvable:$true] %s48_s20 }
  0x31   :  { %s3473_s21 = scalar_lea.vmem %s49_s20, 256  ;;  %p3478_p7 = scmp.lt.s32.totalorder %s49_s20, %s49_s20 }
  0x32   :  { %p3474_p6 = scmp.ne.s32.totalorder %s49_s20, %s3473_s21  ;;  %p3479_p8 = scmp.lt.s32.totalorder %s3473_s21, %s3473_s21 }
  0x34   :  { %p3480_p9 = por %p3479_p8, %p3478_p7 }
  0x36   :  { %p3481_p10 = pnand %p3480_p9, %p3474_p6 }
  0x38   :  { %3484 = shalt.err (!%p3481_p10)
}
  0x39   :  { %s3560_s6 = smov 64   ;;  %s3561_s22 = smov 4  }
  0x3a   :  { %54 = dma.hbm_to_vmem [thread:$0]  %s4437_s3, 256, %s49_s20, [#allocation6], %s3560_s6, %s3560_s6, %s3561_s22  }
  0x3b   :  { %s3562_s25 = smov [#allocation10]   ;;  %s3563_s26 = smov [#allocation13]  }
  0x3c   :  { %s70_s1 = sshll.u32 %s3562_s25, 4  ;;  %s95_s27 = sshll.u32 %s3563_s26, 4  ;;  %s71_s1 = int_to_ptr.vmem [resolvable:$true] %s70_s1  ;;  %s96_s27 = int_to_ptr.vmem [resolvable:$true] %s95_s27 }
  0x3d   :  { %s3493_s28 = scalar_lea.vmem %s71_s1, 256  ;;  %p3498_p12 = scmp.lt.s32.totalorder %s71_s1, %s71_s1 }
  0x3e   :  { %p3494_p11 = scmp.ne.s32.totalorder %s71_s1, %s3493_s28  ;;  %p3499_p13 = scmp.lt.s32.totalorder %s3493_s28, %s3493_s28 }
  0x40   :  { %p3500_p0 = por %p3499_p13, %p3498_p12 }
  0x42   :  { %p3501_p1 = pnand %p3500_p0, %p3494_p11 }
  0x44   :  { %3504 = shalt.err (!%p3501_p1)
}
  0x45   :  { %76 = dma.hbm_to_vmem [thread:$0]  %s4439_s5, 256, %s71_s1, [#allocation9], %s3560_s6, %s3560_s6, %s3561_s22  }
  0x46   :  { %s3513_s3 = scalar_lea.vmem %s96_s27, 16  ;;  %s3517_s12 = scalar_lea.vmem %s96_s27, 32 }
  0x47   :  { %p3514_p2 = scmp.ne.s32.totalorder %s96_s27, %s3513_s3  ;;  %p3518_p3 = scmp.lt.s32.totalorder %s96_s27, %s96_s27 }
  0x48   :  { %p3519_p4 = scmp.lt.s32.totalorder %s3517_s12, %s3513_s3 }
  0x4a   :  { %p3520_p5 = por %p3519_p4, %p3518_p3 }
  0x4c   :  { %p3521_p6 = pnand %p3520_p5, %p3514_p2 }
  0x4e   :  { %3524 = shalt.err (!%p3521_p6)
}
  0x4f   :  { %98 = dma.hbm_to_vmem [thread:$0]  %s4442_s8, 16, %s96_s27, [#allocation12]  }
  0x50   :  { %3545 = dma.done.wait [#allocation3], 64  }
  0x51   :  { %3546 = vsyncadd [#allocation3], 4294967232 }
  0x52   :  { %3547 = dma.done.wait [#allocation6], 272  }
  0x53   :  { %3548 = vsyncadd [#allocation6], 4294967024 }
  0x54   :  { %3549 = dma.done.wait [#allocation9], 272  }
  0x55   :  { %3550 = vsyncadd [#allocation9], 4294967024 }
  0x56   :  { %3551 = dma.done.wait [#allocation12], 32  }
  0x57   :  { %3552 = vsyncadd [#allocation12], 4294967264  ;;  %v3564_v0 = vmov 0.0   ;;  %vm3565_vm0 = vmmov 0   ;;  %vm172_vm1 = vcmask 1043456   ;;  %v3657_v3 = vld [vmem:[#allocation7 + $0x8] sm:$0xff]  }
  0x58   :  { %2912 = vmatprep.subr.bf16.mxu1 %v3564_v0  ;;  %2916 = vmatprep.mubr.msk.bf16.mxu1 %vm3565_vm0, %v3564_v0  ;;  %v125_v1 = vld [vmem:[#allocation2] sm:$0xf]  ;;  %v160_v5 = vld [vmem:[%s4434_s0 + $0x8] sm:$0xff]  ;;  %vm165_vm2 = vcmask 64512   ;;  %v161_v7 = vld [vmem:[%s4434_s0 + $0x10] sm:$0xff]  ;;  %v3566_v11 = vmov 0  }
  0x59   :  { %3115 = vmatprep.subr.msk.bf16.mxu0 %vm172_vm1, %v125_v1  ;;  %v174_v2 = vsel %vm172_vm1, %v125_v1, 0  ;;  %v159_v4 = vld [vmem:[%s4434_s0] sm:$0xff]  ;;  %v162_v8 = vld [vmem:[%s4434_s0 + $0x18] sm:$0xff]  ;;  %2913 = vmatpush3.bf16.msra.mxu1 %v3657_v3  ;;  %v3683_v12 = vld [vmem:[#allocation8] ss:$0 sm:$0xff]  ;;  %s3567_s0 = smov 96  }
  0x5a   :  { %2907 = vmatpush3.bf16.msra.mxu0 %v174_v2  ;;  %v163_v6 = vpack.c.bf16 %v160_v5, %v159_v4  ;;  %v164_v9 = vpack.c.bf16 %v162_v8, %v161_v7  ;;  %v3672_v10 = vld [vmem:[#allocation7] sm:$0xff]   ;;  %2914 = vmatprep.subr.bf16.mxu1 %v3564_v0  ;;  %v2755_v25 = vld [vmem:[#allocation5] ss:$0 sm:$0xff]  ;;  %vm413_vm3 = vcmask 1041409   ;;  %vm416_vm4 = vcmask 1042434   ;;  %s3568_s13 = smov [#allocation14]  }
  0x5b   :  { %2920 = vmatprep.subr.bf16.mxu0 %v3564_v0  ;;  %v3720_v8 = vld [vmem:[#allocation10 + $0x8] sm:$0xff]   ;;  %vm419_vm5 = vcmask 1043459   ;;  %vm248_vm6 = vcmask 261120   ;;  %s2738_s14 = sshll.u32 %s3568_s13, 4  ;;  %vm2730_vm7 = vcmask 27648   ;;  %s2739_s14 = int_to_ptr.vmem [resolvable:$true] %s2738_s14 }
  0x5c   :  { %2908 = vmatprep.mubr.msk.bf16.mxu0 %vm165_vm2, %v163_v6  ;;  %s3525_s5 = scalar_lea.vmem %s2739_s14, 64  ;;  %p3530_p8 = scmp.lt.s32.totalorder %s2739_s14, %s2739_s14 }
  0x5d   :  { %2909 = vmatmul.mubr.msk.bf16.vlgmr.msra.gmra.mxu0 %vm165_vm2, %v164_v9  ;;  %2915 = vmatpush3.bf16.msra.mxu1 %v3672_v10  ;;  %v3725_v9 = vld [vmem:[%s4441_s7 + $0x8] sm:$0xff]   ;;  %p3526_p7 = scmp.ne.s32.totalorder %s2739_s14, %s3525_s5  ;;  %p3531_p9 = scmp.lt.s32.totalorder %s3525_s5, %s3525_s5 }
  0x5e   :  { %2924 = vmatprep.mubr.msk.bf16.mxu0 %vm3565_vm0, %v3564_v0  ;;  %2928 = vmatprep.subr.bf16.mxu1 %v3564_v0 }
  0x5f   :  { %2921 = vmatpush3.bf16.msra.mxu0 %v3720_v8  ;;  %p3532_p10 = por %p3531_p9, %p3530_p8 }
  0x60   :  { %2917 = vmatmul.mubr.bf16.vlgmr.msra.gmra.mxu1 %v3566_v11  ;;  %2922 = vmatprep.subr.bf16.mxu0 %v3564_v0 }
  0x61   :  { %2932 = vmatprep.mubr.msk.bf16.mxu1 %vm3565_vm0, %v3564_v0  ;;  %2929 = vmatpush3.bf16.msra.mxu1 %v3725_v9  ;;  %p3533_p11 = pnand %p3532_p10, %p3526_p7 }
  0x62   :  { %2930 = vmatprep.subr.bf16.mxu1 %v3564_v0 }
 0x11d   :  { %v2910_v21 = vpop.f32.mrf.mxu0 }
 0x11e   :  { %v3694_v28 = vadd.f32 %v2910_v21, %v2755_v25 }
 0x11f   :  { %v210_v22 = vpop.f32.mrf.mxu0 }
 0x120   :  { %v286_v13 = vpop.f32.mrf.mxu1  ;;  %v3692_v27 = vadd.f32 %v2755_v25, %v210_v22 }
 0x121   :  { %v287_v14 = vadd.f32 %v3683_v12, %v286_v13  ;;  %v2911_v23 = vpop.f32.mrf.mxu0  ;;  %v3729_v13 = vld [vmem:[#allocation10] sm:$0xff]  }
 0x122   :  { %v2918_v15 = vpop.f32.mrf.mxu1  ;;  %v3698_v31 = vadd.f32 %v2911_v23, %v2755_v25  ;;  %2923 = vmatpush3.bf16.msra.mxu0 %v3729_v13 }
 0x123   :  { %328 = vrot.lane.b32.xlu1 %v287_v14, %s3560_s6  ;;  %v293_v16 = vrot.slane %v287_v14, 1  ;;  %v295_v18 = vrot.slane %v287_v14, 3  ;;  %v294_v20 = vrot.slane %v287_v14, 2  ;;  %v213_v24 = vpop.f32.mrf.mxu0  ;;  %v300_v30 = vadd.f32 %v287_v14, %v3692_v27  ;;  %v3734_v14 = vld [vmem:[%s4441_s7] sm:$0xff]   ;;  %2936 = vmatprep.subr.bf16.mxu0 %v3564_v0 }
 0x124   :  { %v289_v17 = vpop.f32.mrf.mxu1  ;;  %v3690_v26 = vadd.f32 %v2755_v25, %v213_v24  ;;  %2931 = vmatpush3.bf16.msra.mxu1 %v3734_v14 }
 0x125   :  { %330 = vrot.lane.b32.xlu0 %v293_v16, %s3560_s6  ;;  %v302_v33 = vadd.f32 %v294_v20, %v3694_v28  ;;  %v2758_v34 = vmul.f32 -1.442695, %v300_v30  ;;  %v303_v35 = vadd.f32 %v295_v18, %v3698_v31  ;;  %2944 = vmatprep.subr.bf16.mxu1 %v3564_v0 }
 0x126   :  { %v2919_v19 = vpop.f32.mrf.mxu1  ;;  %v301_v29 = vadd.f32 %v293_v16, %v3690_v26 }
 0x127   :  { %334 = vrot.lane.b32.xlu1 %v295_v18, %s3560_s6  ;;  %v2760_v36 = vmul.f32 -1.442695, %v302_v33  ;;  %v2761_v37 = vmul.f32 -1.442695, %v303_v35  ;;  %2933 = vmatmul.mubr.bf16.vlgmr.msra.gmra.mxu1 %v3566_v11 }
 0x128   :  { %v2759_v32 = vmul.f32 -1.442695, %v301_v29  ;;  %2945 = vmatpush3.bf16.msra.mxu1 %v3720_v8  ;;  %2948 = vmatprep.mubr.msk.bf16.mxu1 %vm3565_vm0, %v3564_v0 }
 0x129   :  { %332 = vrot.lane.b32.xlu0 %v294_v20, %s3560_s6  ;;  %2946 = vmatprep.subr.bf16.mxu1 %v3564_v0 }
 0x12a   :  { %3136 = vpow2.f32 %v2759_v32 }
 0x12b   :  { %3138 = vpow2.f32 %v2758_v34 }
 0x12c   :  { %3140 = vpow2.f32 %v2760_v36  ;;  %2947 = vmatpush3.bf16.msra.mxu1 %v3729_v13 }
 0x12d   :  { %3142 = vpow2.f32 %v2761_v37  ;;  %2960 = vmatprep.subr.bf16.mxu1 %v3564_v0 }
 0x137   :  { %v3137_v38 = vpop.eup %3136 }
 0x138   :  { %v3139_v39 = vpop.eup %3138  ;;  %v317_v40 = vadd.f32 1.0, %v3137_v38 }
 0x139   :  { %v3141_v41 = vpop.eup %3140  ;;  %v316_v42 = vadd.f32 1.0, %v3139_v39 }
 0x13a   :  { %3144 = vrcp.f32 %v317_v40  ;;  %v318_v43 = vadd.f32 1.0, %v3141_v41  ;;  %v3143_v44 = vpop.eup %3142 }
 0x13b   :  { %3146 = vrcp.f32 %v316_v42  ;;  %v319_v45 = vadd.f32 1.0, %v3143_v44 }
 0x13c   :  { %3148 = vrcp.f32 %v318_v43 }
 0x13d   :  { %3150 = vrcp.f32 %v319_v45 }
 0x147   :  { %v3145_v46 = vpop.eup %3144 }
 0x148   :  { %v3702_v50 = vpop.eup %3146  ;;  %v369_v15 = vsub.f32 1.0, %v3145_v46  ;;  %v393_v17 = vmul.f32 0.0, %v3145_v46 }
 0x149   :  { %v3149_v51 = vpop.eup %3148  ;;  %v368_v11 = vsub.f32 1.0, %v3702_v50  ;;  %v392_v29 = vmul.f32 0.0, %v3702_v50 }
 0x14a   :  { %v3708_v56 = vpop.eup %3150  ;;  %v370_v20 = vsub.f32 1.0, %v3149_v51  ;;  %v394_v23 = vmul.f32 0.0, %v3149_v51 }
 0x14b   :  { %v371_v33 = vsub.f32 1.0, %v3708_v56  ;;  %v395_v38 = vmul.f32 0.0, %v3708_v56 }
 0x195   :  { %v329_v47 = vpop.permute.xlu1 %328 }
 0x196   :  { %v340_v54 = vmul.f32 %v3702_v50, %v329_v47 }
 0x197   :  { %v331_v48 = vpop.permute.xlu0 %330 }
 0x198   :  { %v341_v49 = vmul.f32 %v3145_v46, %v331_v48 }
 0x199   :  { %v335_v55 = vpop.permute.xlu1 %334 }
 0x19a   :  { %350 = vrot.lane.b32.xlu0 %v341_v49, %s3560_s6  ;;  %v343_v57 = vmul.f32 %v3708_v56, %v335_v55 }
 0x19b   :  { %v333_v52 = vpop.permute.xlu0 %332 }
 0x19c   :  { %v342_v53 = vmul.f32 %v3149_v51, %v333_v52 }
 0x19e   :  { %352 = vrot.lane.b32.xlu1 %v342_v53, %s3560_s6  ;;  %348 = vrot.lane.b32.xlu0 %v340_v54, %s3560_s6 }
 0x1a2   :  { %354 = vrot.lane.b32.xlu1 %v343_v57, %s3560_s6 }
 0x1e7   :  { %v525_v54 = vpop.f32.mrf.mxu1 }
 0x1e9   :  { %v2934_v55 = vpop.f32.mrf.mxu1 }
 0x1eb   :  { %v528_v56 = vpop.f32.mrf.mxu1 }
 0x1ed   :  { %v2935_v57 = vpop.f32.mrf.mxu1 }
 0x20c   :  { %v351_v58 = vpop.permute.xlu0 %350 }
 0x20d   :  { %v361_v59 = vadd.f32 %v351_v58, %v3690_v26 }
 0x20f   :  { %3152 = vtanh.f32 %v361_v59 }
 0x210   :  { %v353_v60 = vpop.permute.xlu1 %352  ;;  %v349_v61 = vpop.permute.xlu0 %348 }
 0x211   :  { %v362_v62 = vadd.f32 %v353_v60, %v3694_v28  ;;  %v360_v63 = vadd.f32 %v349_v61, %v3692_v27 }
 0x213   :  { %3154 = vtanh.f32 %v362_v62 }
 0x214   :  { %3156 = vtanh.f32 %v360_v63  ;;  %v355_v1 = vpop.permute.xlu1 %354 }
 0x215   :  { %v363_v2 = vadd.f32 %v355_v1, %v3698_v31 }
 0x217   :  { %3158 = vtanh.f32 %v363_v2 }
 0x21c   :  { %v3153_v4 = vpop.eup %3152 }
 0x21d   :  { %378 = vrot.lane.b32.xlu0 %v3153_v4, %s3567_s0 }
 0x220   :  { %v3155_v5 = vpop.eup %3154 }
 0x221   :  { %v3157_v6 = vpop.eup %3156  ;;  %380 = vrot.lane.b32.xlu1 %v3155_v5, %s3567_s0 }
 0x222   :  { %376 = vrot.lane.b32.xlu0 %v3157_v6, %s3567_s0 }
 0x224   :  { %v3159_v7 = vpop.eup %3158 }
 0x225   :  { %382 = vrot.lane.b32.xlu1 %v3159_v7, %s3567_s0 }
 0x28f   :  { %v379_v16 = vpop.permute.xlu0 %378 }
 0x290   :  { %v389_v18 = vmul.f32 %v379_v16, %v369_v15 }
 0x292   :  { %v3749_v19 = vadd.f32 %v393_v17, %v389_v18 }
 0x293   :  { %v381_v21 = vpop.permute.xlu1 %380 }
 0x294   :  { %v401_v22 = vpack.c.bf16 %v3749_v19, %v3749_v19  ;;  %v390_v24 = vmul.f32 %v381_v21, %v370_v20  ;;  %v377_v25 = vpop.permute.xlu0 %376 }
 0x295   :  { %v388_v30 = vmul.f32 %v377_v25, %v368_v11 }
 0x296   :  { %v3755_v32 = vadd.f32 %v394_v23, %v390_v24  ;;  %v409_v36 = vunpack.c.l.b16 %v401_v22 }
 0x297   :  { %v3758_v34 = vadd.f32 %v392_v29, %v388_v30  ;;  %v383_v35 = vpop.permute.xlu1 %382 }
 0x298   :  { %v402_v37 = vpack.c.bf16 %v3755_v32, %v3755_v32  ;;  %v391_v39 = vmul.f32 %v383_v35, %v371_v33  ;;  %v412_v44 = vrot.slane %v409_v36, 7 }
 0x299   :  { %v400_v40 = vpack.c.bf16 %v3758_v34, %v3758_v34 }
 0x29a   :  { %v410_v41 = vunpack.c.l.b16 %v402_v37  ;;  %v3765_v42 = vadd.f32 %v395_v38, %v391_v39 }
 0x29b   :  { %v408_v43 = vunpack.c.l.b16 %v400_v40 }
 0x29c   :  { %v403_v45 = vpack.c.bf16 %v3765_v42, %v3765_v42  ;;  %v415_v46 = vrot.slane %v410_v41, 6 }
 0x29d   :  { %v414_v48 = vsel %vm413_vm3, %v412_v44, %v408_v43 }
 0x29e   :  { %v411_v47 = vunpack.c.l.b16 %v403_v45  ;;  %v417_v50 = vsel %vm416_vm4, %v415_v46, %v414_v48 }
 0x2a0   :  { %v418_v49 = vrot.slane %v411_v47, 5 }
 0x2a2   :  { %v420_v51 = vsel %vm419_vm5, %v418_v49, %v417_v50  ;;  %v3804_v50 = vld [vmem:[#allocation13] ss:$0 sm:$0xff] }
 0x2a3   :  { %v421_v52 = vpack.c.b16 %v420_v51, %v420_v51  ;;  %v526_v51 = vadd.f32 %v3804_v50, %v525_v54 }
 0x2a5   :  { %422 = vrot.lane.b32.xlu0 %v421_v52, %s3567_s0  ;;  %v3810_v52 = vld [vmem:[#allocation11] ss:$0 sm:$0xff] }
 0x317   :  { %v423_v53 = vpop.permute.xlu0 %422 }
 0x318   :  { %2925 = vmatmul.mubr.msk.bf16.vlgmr.msra.gmra.mxu0 %vm248_vm6, %v423_v53 }
 0x319   :  { %2937 = vmatpush3.bf16.msra.mxu0 %v3657_v3  ;;  %2940 = vmatprep.mubr.msk.bf16.mxu0 %vm3565_vm0, %v3564_v0 }
 0x31a   :  { %2938 = vmatprep.subr.bf16.mxu0 %v3564_v0 }
 0x31d   :  { %2939 = vmatpush3.bf16.msra.mxu0 %v3672_v10 }
 0x31e   :  { %2952 = vmatprep.subr.bf16.mxu0 %v3564_v0 }
 0x320   :  { %2941 = vmatmul.mubr.msk.bf16.vlgmr.msra.gmra.mxu0 %vm248_vm6, %v423_v53 }
 0x321   :  { %2953 = vmatpush3.bf16.msra.mxu0 %v3725_v9  ;;  %2956 = vmatprep.mubr.msk.bf16.mxu0 %vm3565_vm0, %v3564_v0 }
 0x322   :  { %2954 = vmatprep.subr.bf16.mxu0 %v3564_v0 }
 0x325   :  { %2955 = vmatpush3.bf16.msra.mxu0 %v3734_v14 }
 0x326   :  { %2968 = vmatprep.subr.bf16.mxu0 %v3564_v0 }
 0x3d8   :  { %v473_v58 = vpop.f32.mrf.mxu0 }
 0x3d9   :  { %v474_v53 = vadd.f32 %v3810_v52, %v473_v58 }
 0x3da   :  { %v2926_v59 = vpop.f32.mrf.mxu0 }
 0x3db   :  { %v531_v55 = vadd.f32 %v526_v51, %v474_v53 }
 0x3dc   :  { %v476_v60 = vpop.f32.mrf.mxu0 }
 0x3dd   :  { %v2767_v56 = vmul.f32 -1.442695, %v531_v55 }
 0x3de   :  { %v2927_v61 = vpop.f32.mrf.mxu0 }
 0x3e0   :  { %v591_v62 = vpop.f32.mrf.mxu0 }
 0x3e1   :  { %v592_v63 = vadd.f32 %v3683_v12, %v591_v62 }
 0x3e2   :  { %v2942_v1 = vpop.f32.mrf.mxu0 }
 0x3e3   :  { %v599_v2 = vrot.slane %v592_v63, 1  ;;  %v598_v4 = vrot.slane %v592_v63, 7  ;;  %v600_v7 = vrot.slane %v592_v63, 2  ;;  %v606_v17 = vadd.f32 %v592_v63, %v3690_v26 }
 0x3e4   :  { %v594_v5 = vpop.f32.mrf.mxu0 }
 0x3e5   :  { %637 = vrot.lane.b32.xlu0 %v599_v2, %s3560_s6  ;;  %633 = vrot.lane.b32.xlu1 %v598_v4, %s3560_s6  ;;  %v607_v15 = vadd.f32 %v599_v2, %v3694_v28  ;;  %v605_v16 = vadd.f32 %v598_v4, %v3692_v27  ;;  %v608_v21 = vadd.f32 %v600_v7, %v3698_v31  ;;  %v2770_v11 = vmul.f32 -1.442695, %v606_v17 }
 0x3e6   :  { %v2943_v6 = vpop.f32.mrf.mxu0 }
 0x3e7   :  { %v2771_v18 = vmul.f32 -1.442695, %v607_v15  ;;  %v2769_v20 = vmul.f32 -1.442695, %v605_v16  ;;  %v2772_v22 = vmul.f32 -1.442695, %v608_v21 }
 0x3e8   :  { %v701_v21 = vrot.slane %v3758_v34, 7 }
 0x3e9   :  { %639 = vrot.lane.b32.xlu0 %v600_v7, %s3560_s6  ;;  %635 = vrot.lane.b32.xlu1 %v592_v63, %s3560_s6  ;;  %3160 = vpow2.f32 %v2771_v18  ;;  %v703_v18 = vrot.slane %v3755_v32, 7 }
 0x3ea   :  { %3162 = vpow2.f32 %v2769_v20 }
 0x3eb   :  { %3164 = vpow2.f32 %v2770_v11 }
 0x3ec   :  { %3166 = vpow2.f32 %v2772_v22 }
 0x3f6   :  { %v3161_v23 = vpop.eup %3160 }
 0x3f7   :  { %v3163_v24 = vpop.eup %3162  ;;  %v623_v25 = vadd.f32 1.0, %v3161_v23 }
 0x3f8   :  { %v3165_v29 = vpop.eup %3164  ;;  %v621_v30 = vadd.f32 1.0, %v3163_v24 }
 0x3f9   :  { %v3167_v33 = vpop.eup %3166  ;;  %v622_v35 = vadd.f32 1.0, %v3165_v29  ;;  %3168 = vrcp.f32 %v623_v25 }
 0x3fa   :  { %3170 = vrcp.f32 %v621_v30  ;;  %v624_v36 = vadd.f32 1.0, %v3167_v33  ;;  %v704_v33 = vrot.slane %v3765_v42, 7 }
 0x3fb   :  { %3172 = vrcp.f32 %v622_v35 }
 0x3fc   :  { %3174 = vrcp.f32 %v624_v36 }
 0x3fd   :  { %3176 = vpow2.f32 %v2767_v56 }
 0x406   :  { %v3169_v37 = vpop.eup %3168 }
 0x407   :  { %v3171_v38 = vpop.eup %3170  ;;  %v675_v20 = vsub.f32 1.0, %v3169_v37  ;;  %v711_v24 = vmul.f32 %v3169_v37, %v703_v18 }
 0x408   :  { %v3796_v44 = vpop.eup %3172  ;;  %v673_v11 = vsub.f32 1.0, %v3171_v38  ;;  %v709_v29 = vmul.f32 %v3171_v38, %v701_v21 }
 0x409   :  { %v3800_v45 = vpop.eup %3174  ;;  %v674_v32 = vsub.f32 1.0, %v3796_v44 }
 0x40a   :  { %v3177_v62 = vpop.eup %3176  ;;  %v676_v36 = vsub.f32 1.0, %v3800_v45 }
 0x40b   :  { %v535_v4 = vadd.f32 1.0, %v3177_v62 }
 0x457   :  { %v638_v39 = vpop.permute.xlu0 %637  ;;  %v634_v40 = vpop.permute.xlu1 %633 }
 0x458   :  { %v647_v41 = vmul.f32 %v3169_v37, %v638_v39  ;;  %v645_v43 = vmul.f32 %v3171_v38, %v634_v40  ;;  %v702_v39 = vrot.slane %v3749_v19, 7  ;;  %v712_v38 = vmul.f32 %v3800_v45, %v704_v33 }
 0x45a   :  { %657 = vrot.lane.b32.xlu0 %v647_v41, %s3560_s6  ;;  %653 = vrot.lane.b32.xlu1 %v645_v43, %s3560_s6 }
 0x45b   :  { %v640_v46 = vpop.permute.xlu0 %639  ;;  %v636_v47 = vpop.permute.xlu1 %635 }
 0x45c   :  { %v648_v48 = vmul.f32 %v3800_v45, %v640_v46  ;;  %v646_v49 = vmul.f32 %v3796_v44, %v636_v47  ;;  %v710_v46 = vmul.f32 %v3796_v44, %v702_v39 }
 0x45e   :  { %659 = vrot.lane.b32.xlu0 %v648_v48, %s3560_s6  ;;  %655 = vrot.lane.b32.xlu1 %v646_v49, %s3560_s6 }
 0x462   :  { %539 = vrot.lane.b32.xlu1 %v526_v51, %s3560_s6 }
 0x4cc   :  { %v658_v57 = vpop.permute.xlu0 %657  ;;  %v654_v59 = vpop.permute.xlu1 %653 }
 0x4cd   :  { %v667_v60 = vadd.f32 %v658_v57, %v3694_v28  ;;  %v665_v61 = vadd.f32 %v654_v59, %v3692_v27 }
 0x4cf   :  { %3178 = vtanh.f32 %v667_v60 }
 0x4d0   :  { %3180 = vtanh.f32 %v665_v61  ;;  %v660_v63 = vpop.permute.xlu0 %659  ;;  %v656_v54 = vpop.permute.xlu1 %655 }
 0x4d1   :  { %v668_v1 = vadd.f32 %v660_v63, %v3698_v31  ;;  %v666_v2 = vadd.f32 %v656_v54, %v3690_v26 }
 0x4d3   :  { %3182 = vtanh.f32 %v668_v1 }
 0x4d4   :  { %3184 = vtanh.f32 %v666_v2  ;;  %v540_v15 = vpop.permute.xlu1 %539 }
 0x4d5   :  { %3186 = vrcp.f32 %v535_v4 }
 0x4dc   :  { %v3179_v58 = vpop.eup %3178 }
 0x4dd   :  { %v3181_v5 = vpop.eup %3180  ;;  %685 = vrot.lane.b32.xlu1 %v3179_v58, %s3567_s0 }
 0x4de   :  { %681 = vrot.lane.b32.xlu0 %v3181_v5, %s3567_s0 }
 0x4e0   :  { %v3183_v6 = vpop.eup %3182 }
 0x4e1   :  { %v3185_v7 = vpop.eup %3184  ;;  %687 = vrot.lane.b32.xlu1 %v3183_v6, %s3567_s0 }
 0x4e2   :  { %683 = vrot.lane.b32.xlu0 %v3185_v7, %s3567_s0  ;;  %v3187_v16 = vpop.eup %3186 }
 0x4e3   :  { %v542_v17 = vmul.f32 %v3187_v16, %v540_v15  ;;  %v555_v6 = vmul.f32 0.0, %v3187_v16 }
 0x4e6   :  { %544 = vrot.lane.b32.xlu0 %v542_v17, %s3560_s6 }
 0x54f   :  { %v686_v22 = vpop.permute.xlu1 %685 }
 0x550   :  { %v682_v23 = vpop.permute.xlu0 %681  ;;  %v695_v25 = vmul.f32 %v686_v22, %v675_v20 }
 0x551   :  { %v693_v30 = vmul.f32 %v682_v23, %v673_v11 }
 0x552   :  { %v3825_v35 = vadd.f32 %v711_v24, %v695_v25 }
 0x553   :  { %v3829_v40 = vadd.f32 %v709_v29, %v693_v30  ;;  %v688_v34 = vpop.permute.xlu1 %687 }
 0x554   :  { %v719_v41 = vpack.c.bf16 %v3825_v35, %v3825_v35  ;;  %v684_v37 = vpop.permute.xlu0 %683  ;;  %v696_v43 = vmul.f32 %v688_v34, %v676_v36 }
 0x555   :  { %v717_v42 = vpack.c.bf16 %v3829_v40, %v3829_v40  ;;  %v694_v47 = vmul.f32 %v684_v37, %v674_v32 }
 0x556   :  { %v3838_v48 = vadd.f32 %v712_v38, %v696_v43  ;;  %v727_v51 = vunpack.c.l.b16 %v719_v41 }
 0x557   :  { %v725_v19 = vunpack.c.l.b16 %v717_v42  ;;  %v3840_v49 = vadd.f32 %v710_v46, %v694_v47 }
 0x558   :  { %v720_v55 = vpack.c.bf16 %v3838_v48, %v3838_v48  ;;  %v545_v56 = vpop.permute.xlu0 %544  ;;  %v731_v44 = vrot.slane %v727_v51, 7 }
 0x559   :  { %v718_v45 = vpack.c.bf16 %v3840_v49, %v3840_v49  ;;  %v547_v57 = vadd.f32 %v545_v56, %v474_v53  ;;  %v729_v60 = vrot.slane %v725_v19, 1  ;;  %v549_v53 = vsub.f32 1.0, %v3187_v16 }
 0x55a   :  { %v728_v59 = vunpack.c.l.b16 %v720_v55 }
 0x55b   :  { %v726_v61 = vunpack.c.l.b16 %v718_v45  ;;  %3188 = vtanh.f32 %v547_v57 }
 0x55c   :  { %v733_v62 = vrot.slane %v728_v59, 6 }
 0x55d   :  { %v730_v63 = vsel %vm413_vm3, %v726_v61, %v729_v60 }
 0x55e   :  { %v732_v54 = vsel %vm416_vm4, %v731_v44, %v730_v63 }
 0x55f   :  { %v734_v1 = vsel %vm419_vm5, %v733_v62, %v732_v54 }
 0x560   :  { %v735_v2 = vpack.c.b16 %v734_v1, %v734_v1 }
 0x562   :  { %736 = vrot.lane.b32.xlu1 %v735_v2, %s3567_s0 }
 0x568   :  { %v3189_v4 = vpop.eup %3188 }
 0x569   :  { %551 = vrot.lane.b32.xlu0 %v3189_v4, %s3567_s0 }
 0x5d4   :  { %v737_v58 = vpop.permute.xlu1 %736 }
 0x5d5   :  { %2949 = vmatmul.mubr.msk.bf16.vlgmr.msra.gmra.mxu1 %vm248_vm6, %v737_v58 }
 0x5d6   :  { %2961 = vmatpush3.bf16.msra.mxu1 %v3657_v3  ;;  %2964 = vmatprep.mubr.msk.bf16.mxu1 %vm3565_vm0, %v3564_v0 }
 0x5d7   :  { %2962 = vmatprep.subr.bf16.mxu1 %v3564_v0 }
 0x5da   :  { %2963 = vmatpush3.bf16.msra.mxu1 %v3672_v10 }
 0x5db   :  { %v552_v5 = vpop.permute.xlu0 %551  ;;  %2976 = vmatprep.subr.bf16.mxu1 %v3564_v0 }
 0x5dc   :  { %v554_v7 = vmul.f32 %v552_v5, %v549_v53 }
 0x5dd   :  { %2965 = vmatmul.mubr.msk.bf16.vlgmr.msra.gmra.mxu1 %vm248_vm6, %v737_v58 }
 0x5de   :  { %v3859_v15 = vadd.f32 %v555_v6, %v554_v7  ;;  %2977 = vmatpush3.bf16.msra.mxu1 %v3725_v9  ;;  %2980 = vmatprep.mubr.msk.bf16.mxu1 %vm3565_vm0, %v3564_v0 }
 0x5df   :  { %2978 = vmatprep.subr.bf16.mxu1 %v3564_v0 }
 0x5e0   :  { %v781_v17 = vpack.c.bf16 %v3859_v15, %v3859_v15 }
 0x5e2   :  { %783 = vrot.lane.b32.xlu1 %v781_v17, %s3567_s0  ;;  %2979 = vmatpush3.bf16.msra.mxu1 %v3734_v14 }
 0x5e3   :  { %2992 = vmatprep.subr.bf16.mxu1 %v3564_v0 }
 0x654   :  { %v784_v16 = vpop.permute.xlu1 %783 }
 0x655   :  { %2957 = vmatmul.mubr.msk.bf16.vlgmr.msra.gmra.mxu0 %vm248_vm6, %v784_v16 }
 0x656   :  { %2969 = vmatpush3.bf16.msra.mxu0 %v3720_v8  ;;  %2972 = vmatprep.mubr.msk.bf16.mxu0 %vm3565_vm0, %v3564_v0 }
 0x657   :  { %2970 = vmatprep.subr.bf16.mxu0 %v3564_v0 }
 0x65a   :  { %2971 = vmatpush3.bf16.msra.mxu0 %v3729_v13 }
 0x65b   :  { %2984 = vmatprep.subr.bf16.mxu0 %v3564_v0 }
 0x695   :  { %v775_v18 = vpop.f32.mrf.mxu1 }
 0x697   :  { %v2950_v20 = vpop.f32.mrf.mxu1 }
 0x698   :  { %v776_v20 = vadd.f32 %v3810_v52, %v775_v18 }
 0x699   :  { %v778_v21 = vpop.f32.mrf.mxu1 }
 0x69b   :  { %v2951_v11 = vpop.f32.mrf.mxu1 }
 0x69d   :  { %v888_v22 = vpop.f32.mrf.mxu1 }
 0x69e   :  { %v889_v23 = vadd.f32 %v3683_v12, %v888_v22 }
 0x69f   :  { %v2966_v24 = vpop.f32.mrf.mxu1 }
 0x6a0   :  { %v896_v25 = vrot.slane %v889_v23, 7  ;;  %v895_v29 = vrot.slane %v889_v23, 6  ;;  %v897_v36 = vrot.slane %v889_v23, 1  ;;  %v904_v34 = vadd.f32 %v889_v23, %v3694_v28 }
 0x6a1   :  { %v891_v30 = vpop.f32.mrf.mxu1 }
 0x6a2   :  { %932 = vrot.lane.b32.xlu1 %v896_v25, %s3560_s6  ;;  %930 = vrot.lane.b32.xlu0 %v895_v29, %s3560_s6  ;;  %v903_v39 = vadd.f32 %v896_v25, %v3690_v26  ;;  %v902_v32 = vadd.f32 %v895_v29, %v3692_v27  ;;  %v905_v38 = vadd.f32 %v897_v36, %v3698_v31  ;;  %v2779_v43 = vmul.f32 -1.442695, %v904_v34 }
 0x6a3   :  { %v2967_v33 = vpop.f32.mrf.mxu1 }
 0x6a4   :  { %v2778_v41 = vmul.f32 -1.442695, %v903_v39  ;;  %v2777_v37 = vmul.f32 -1.442695, %v902_v32  ;;  %v2780_v42 = vmul.f32 -1.442695, %v905_v38 }
 0x6a6   :  { %934 = vrot.lane.b32.xlu1 %v889_v23, %s3560_s6  ;;  %936 = vrot.lane.b32.xlu0 %v897_v36, %s3560_s6  ;;  %3190 = vpow2.f32 %v2778_v41 }
 0x6a7   :  { %3192 = vpow2.f32 %v2777_v37 }
 0x6a8   :  { %3194 = vpow2.f32 %v2779_v43 }
 0x6a9   :  { %3196 = vpow2.f32 %v2780_v42 }
 0x6b3   :  { %v3191_v46 = vpop.eup %3190 }
 0x6b4   :  { %v3193_v47 = vpop.eup %3192  ;;  %v919_v19 = vadd.f32 1.0, %v3191_v46  ;;  %v998_v46 = vrot.slane %v3829_v40, 7 }
 0x6b5   :  { %v3195_v51 = vpop.eup %3194  ;;  %v918_v55 = vadd.f32 1.0, %v3193_v47 }
 0x6b6   :  { %v3197_v56 = vpop.eup %3196  ;;  %v920_v45 = vadd.f32 1.0, %v3195_v51  ;;  %3198 = vrcp.f32 %v919_v19  ;;  %v999_v19 = vrot.slane %v3840_v49, 7 }
 0x6b7   :  { %3200 = vrcp.f32 %v918_v55  ;;  %v921_v57 = vadd.f32 1.0, %v3197_v56 }
 0x6b8   :  { %3202 = vrcp.f32 %v920_v45 }
 0x6b9   :  { %3204 = vrcp.f32 %v921_v57 }
 0x6c3   :  { %v3886_v59 = vpop.eup %3198 }
 0x6c4   :  { %v3201_v60 = vpop.eup %3200  ;;  %v971_v55 = vsub.f32 1.0, %v3886_v59 }
 0x6c5   :  { %v3889_v1 = vpop.eup %3202  ;;  %v970_v47 = vsub.f32 1.0, %v3201_v60  ;;  %v1006_v56 = vmul.f32 %v3201_v60, %v998_v46 }
 0x6c6   :  { %v3205_v4 = vpop.eup %3204  ;;  %v972_v49 = vsub.f32 1.0, %v3889_v1 }
 0x714   :  { %v931_v61 = vpop.permute.xlu0 %930  ;;  %v933_v44 = vpop.permute.xlu1 %932 }
 0x715   :  { %v822_v62 = vpop.f32.mrf.mxu0  ;;  %v942_v63 = vmul.f32 %v3201_v60, %v931_v61  ;;  %v943_v54 = vmul.f32 %v3886_v59, %v933_v44  ;;  %v1007_v61 = vmul.f32 %v3886_v59, %v999_v19 }
 0x716   :  { %v823_v16 = vadd.f32 %v3804_v50, %v822_v62  ;;  %v1001_v62 = vrot.slane %v3838_v48, 7 }
 0x717   :  { %950 = vrot.lane.b32.xlu0 %v942_v63, %s3560_s6  ;;  %952 = vrot.lane.b32.xlu1 %v943_v54, %s3560_s6  ;;  %v2958_v2 = vpop.f32.mrf.mxu0  ;;  %v973_v54 = vsub.f32 1.0, %v3205_v4 }
 0x718   :  { %v937_v58 = vpop.permute.xlu0 %936  ;;  %v935_v53 = vpop.permute.xlu1 %934  ;;  %v828_v21 = vadd.f32 %v823_v16, %v776_v20  ;;  %v1000_v2 = vrot.slane %v3825_v35, 7 }
 0x719   :  { %v825_v5 = vpop.f32.mrf.mxu0  ;;  %v945_v6 = vmul.f32 %v3205_v4, %v937_v58  ;;  %v944_v7 = vmul.f32 %v3889_v1, %v935_v53  ;;  %v1009_v53 = vmul.f32 %v3205_v4, %v1001_v62 }
 0x71a   :  { %v2775_v11 = vmul.f32 -1.442695, %v828_v21  ;;  %v1008_v48 = vmul.f32 %v3889_v1, %v1000_v2 }
 0x71b   :  { %956 = vrot.lane.b32.xlu0 %v945_v6, %s3560_s6  ;;  %954 = vrot.lane.b32.xlu1 %v944_v7, %s3560_s6  ;;  %v2959_v17 = vpop.f32.mrf.mxu0 }
 0x71c   :  { %3206 = vpow2.f32 %v2775_v11 }
 0x71f   :  { %836 = vrot.lane.b32.xlu0 %v823_v16, %s3560_s6 }
 0x729   :  { %v3207_v29 = vpop.eup %3206 }
 0x72a   :  { %v832_v36 = vadd.f32 1.0, %v3207_v29 }
 0x789   :  { %v951_v22 = vpop.permute.xlu0 %950  ;;  %v953_v23 = vpop.permute.xlu1 %952 }
 0x78a   :  { %v962_v24 = vadd.f32 %v951_v22, %v3692_v27  ;;  %v963_v25 = vadd.f32 %v953_v23, %v3690_v26 }
 0x78c   :  { %3208 = vtanh.f32 %v962_v24 }
 0x78d   :  { %3210 = vtanh.f32 %v963_v25  ;;  %v957_v30 = vpop.permute.xlu0 %956  ;;  %v955_v33 = vpop.permute.xlu1 %954 }
 0x78e   :  { %v965_v39 = vadd.f32 %v957_v30, %v3698_v31  ;;  %v964_v32 = vadd.f32 %v955_v33, %v3694_v28 }
 0x790   :  { %3212 = vtanh.f32 %v965_v39 }
 0x791   :  { %3214 = vtanh.f32 %v964_v32  ;;  %v837_v37 = vpop.permute.xlu0 %836 }
 0x792   :  { %3216 = vrcp.f32 %v832_v36 }
 0x799   :  { %v3209_v18 = vpop.eup %3208 }
 0x79a   :  { %v3211_v34 = vpop.eup %3210  ;;  %978 = vrot.lane.b32.xlu1 %v3209_v18, %s3567_s0 }
 0x79b   :  { %980 = vrot.lane.b32.xlu0 %v3211_v34, %s3567_s0 }
 0x79d   :  { %v3213_v41 = vpop.eup %3212 }
 0x79e   :  { %v3215_v38 = vpop.eup %3214  ;;  %984 = vrot.lane.b32.xlu1 %v3213_v41, %s3567_s0 }
 0x79f   :  { %v3217_v43 = vpop.eup %3216  ;;  %982 = vrot.lane.b32.xlu0 %v3215_v38, %s3567_s0 }
 0x7a0   :  { %v839_v42 = vmul.f32 %v3217_v43, %v837_v37  ;;  %v846_v34 = vsub.f32 1.0, %v3217_v43  ;;  %v852_v37 = vmul.f32 %v3217_v43, %v3859_v15 }
 0x7a2   :  { %841 = vrot.lane.b32.xlu1 %v839_v42, %s3560_s6 }
 0x80c   :  { %v979_v51 = vpop.permute.xlu1 %978 }
 0x80d   :  { %v990_v45 = vmul.f32 %v979_v51, %v970_v47  ;;  %v981_v57 = vpop.permute.xlu0 %980 }
 0x80e   :  { %v991_v44 = vmul.f32 %v981_v57, %v971_v55 }
 0x80f   :  { %v3913_v63 = vadd.f32 %v1006_v56, %v990_v45 }
 0x810   :  { %v3916_v40 = vadd.f32 %v1007_v61, %v991_v44  ;;  %v985_v58 = vpop.permute.xlu1 %984 }
 0x811   :  { %v1014_v60 = vpack.c.bf16 %v3913_v63, %v3913_v63  ;;  %v993_v5 = vmul.f32 %v985_v58, %v973_v54  ;;  %v983_v6 = vpop.permute.xlu0 %982 }
 0x812   :  { %v1015_v59 = vpack.c.bf16 %v3916_v40, %v3916_v40  ;;  %v992_v7 = vmul.f32 %v983_v6, %v972_v49 }
 0x813   :  { %v1022_v17 = vunpack.c.l.b16 %v1014_v60  ;;  %v3924_v16 = vadd.f32 %v1009_v53, %v993_v5 }
 0x814   :  { %v1023_v35 = vunpack.c.l.b16 %v1015_v59  ;;  %v3926_v21 = vadd.f32 %v1008_v48, %v992_v7  ;;  %v842_v11 = vpop.permute.xlu1 %841 }
 0x815   :  { %v1026_v22 = vrot.slane %v1022_v17, 2  ;;  %v1017_v23 = vpack.c.bf16 %v3924_v16, %v3924_v16  ;;  %v844_v4 = vadd.f32 %v842_v11, %v776_v20 }
 0x816   :  { %v1027_v24 = vrot.slane %v1023_v35, 1  ;;  %v1016_v25 = vpack.c.bf16 %v3926_v21, %v3926_v21 }
 0x817   :  { %v1025_v29 = vunpack.c.l.b16 %v1017_v23  ;;  %3218 = vtanh.f32 %v844_v4 }
 0x818   :  { %v1024_v1 = vunpack.c.l.b16 %v1016_v25  ;;  %v1028_v30 = vsel %vm413_vm3, %v1027_v24, %v1026_v22 }
 0x819   :  { %v1030_v33 = vrot.slane %v1025_v29, 7 }
 0x81a   :  { %v1029_v36 = vsel %vm416_vm4, %v1024_v1, %v1028_v30 }
 0x81b   :  { %v1031_v39 = vsel %vm419_vm5, %v1030_v33, %v1029_v36 }
 0x81c   :  { %v1032_v32 = vpack.c.b16 %v1031_v39, %v1031_v39 }
 0x81e   :  { %1033 = vrot.lane.b32.xlu0 %v1032_v32, %s3567_s0 }
 0x824   :  { %v3219_v18 = vpop.eup %3218 }
 0x825   :  { %848 = vrot.lane.b32.xlu1 %v3219_v18, %s3567_s0 }
 0x890   :  { %v1034_v20 = vpop.permute.xlu0 %1033 }
 0x891   :  { %2973 = vmatmul.mubr.msk.bf16.vlgmr.msra.gmra.mxu0 %vm248_vm6, %v1034_v20 }
 0x892   :  { %2985 = vmatpush3.bf16.msra.mxu0 %v3657_v3  ;;  %2988 = vmatprep.mubr.msk.bf16.mxu0 %vm3565_vm0, %v3564_v0 }
 0x893   :  { %2986 = vmatprep.subr.bf16.mxu0 %v3564_v0 }
 0x896   :  { %2987 = vmatpush3.bf16.msra.mxu0 %v3672_v10 }
 0x897   :  { %v849_v41 = vpop.permute.xlu1 %848  ;;  %3000 = vmatprep.subr.bf16.mxu0 %v3564_v0 }
 0x898   :  { %v851_v38 = vmul.f32 %v849_v41, %v846_v34 }
 0x899   :  { %2989 = vmatmul.mubr.msk.bf16.vlgmr.msra.gmra.mxu0 %vm248_vm6, %v1034_v20 }
 0x89a   :  { %v3946_v42 = vadd.f32 %v852_v37, %v851_v38  ;;  %3001 = vmatpush3.bf16.msra.mxu0 %v3725_v9  ;;  %3004 = vmatprep.mubr.msk.bf16.mxu0 %vm3565_vm0, %v3564_v0 }
 0x89b   :  { %3002 = vmatprep.subr.bf16.mxu0 %v3564_v0 }
 0x89c   :  { %v1078_v3 = vpack.c.bf16 %v3946_v42, %v3946_v42 }
 0x89e   :  { %1080 = vrot.lane.b32.xlu0 %v1078_v3, %s3567_s0  ;;  %3003 = vmatpush3.bf16.msra.mxu0 %v3734_v14 }
 0x89f   :  { %3016 = vmatprep.subr.bf16.mxu0 %v3564_v0 }
 0x910   :  { %v1081_v10 = vpop.permute.xlu0 %1080 }
 0x911   :  { %2981 = vmatmul.mubr.msk.bf16.vlgmr.msra.gmra.mxu1 %vm248_vm6, %v1081_v10 }
 0x912   :  { %2993 = vmatpush3.bf16.msra.mxu1 %v3720_v8  ;;  %2996 = vmatprep.mubr.msk.bf16.mxu1 %vm3565_vm0, %v3564_v0 }
 0x913   :  { %2994 = vmatprep.subr.bf16.mxu1 %v3564_v0 }
 0x916   :  { %2995 = vmatpush3.bf16.msra.mxu1 %v3729_v13 }
 0x917   :  { %3008 = vmatprep.subr.bf16.mxu1 %v3564_v0 }
 0x951   :  { %v1072_v9 = vpop.f32.mrf.mxu0 }
 0x952   :  { %v1073_v20 = vadd.f32 %v3810_v52, %v1072_v9 }
 0x953   :  { %v2974_v15 = vpop.f32.mrf.mxu0 }
 0x955   :  { %v1075_v43 = vpop.f32.mrf.mxu0 }
 0x957   :  { %v2975_v14 = vpop.f32.mrf.mxu0 }
 0x959   :  { %v1185_v46 = vpop.f32.mrf.mxu0 }
 0x95a   :  { %v1186_v47 = vadd.f32 %v3683_v12, %v1185_v46 }
 0x95b   :  { %v2990_v19 = vpop.f32.mrf.mxu0 }
 0x95c   :  { %v1193_v51 = vrot.slane %v1186_v47, 6  ;;  %v1192_v55 = vrot.slane %v1186_v47, 5  ;;  %v1194_v45 = vrot.slane %v1186_v47, 7  ;;  %v1202_v62 = vadd.f32 %v1186_v47, %v3698_v31 }
 0x95d   :  { %v1188_v8 = vpop.f32.mrf.mxu0 }
 0x95e   :  { %1229 = vrot.lane.b32.xlu0 %v1193_v51, %s3560_s6  ;;  %1227 = vrot.lane.b32.xlu1 %v1192_v55, %s3560_s6  ;;  %v1200_v13 = vadd.f32 %v1193_v51, %v3690_v26  ;;  %v1201_v61 = vadd.f32 %v1194_v45, %v3694_v28  ;;  %v1199_v12 = vadd.f32 %v1192_v55, %v3692_v27  ;;  %v2788_v2 = vmul.f32 -1.442695, %v1202_v62 }
 0x95f   :  { %v2991_v56 = vpop.f32.mrf.mxu0 }
 0x960   :  { %v2786_v57 = vmul.f32 -1.442695, %v1200_v13  ;;  %v2787_v44 = vmul.f32 -1.442695, %v1201_v61  ;;  %v2785_v54 = vmul.f32 -1.442695, %v1199_v12 }
 0x961   :  { %v1296_v12 = vrot.slane %v3916_v40, 7  ;;  %v1298_v40 = vrot.slane %v3924_v16, 7 }
 0x962   :  { %1233 = vrot.lane.b32.xlu0 %v1186_v47, %s3560_s6  ;;  %1231 = vrot.lane.b32.xlu1 %v1194_v45, %s3560_s6  ;;  %3220 = vpow2.f32 %v2786_v57 }
 0x963   :  { %3222 = vpow2.f32 %v2787_v44 }
 0x964   :  { %3224 = vpow2.f32 %v2785_v54 }
 0x965   :  { %3226 = vpow2.f32 %v2788_v2 }
 0x96f   :  { %v3221_v58 = vpop.eup %3220 }
 0x970   :  { %v1216_v49 = vadd.f32 1.0, %v3221_v58  ;;  %v3223_v60 = vpop.eup %3222 }
 0x971   :  { %v3225_v53 = vpop.eup %3224  ;;  %v1217_v5 = vadd.f32 1.0, %v3223_v60  ;;  %v1295_v60 = vrot.slane %v3913_v63, 7 }
 0x972   :  { %3228 = vrcp.f32 %v1216_v49  ;;  %v1215_v6 = vadd.f32 1.0, %v3225_v53  ;;  %v3227_v59 = vpop.eup %3226 }
 0x973   :  { %3230 = vrcp.f32 %v1217_v5  ;;  %v1218_v48 = vadd.f32 1.0, %v3227_v59 }
 0x974   :  { %3232 = vrcp.f32 %v1215_v6 }
 0x975   :  { %3234 = vrcp.f32 %v1218_v48 }
 0x97f   :  { %v3229_v7 = vpop.eup %3228 }
 0x980   :  { %v3975_v24 = vpop.eup %3230  ;;  %v1268_v44 = vsub.f32 1.0, %v3229_v7  ;;  %v1304_v54 = vmul.f32 %v3229_v7, %v1296_v12 }
 0x981   :  { %v3233_v29 = vpop.eup %3232 }
 0x982   :  { %v3981_v32 = vpop.eup %3234  ;;  %v1267_v53 = vsub.f32 1.0, %v3233_v29  ;;  %v1303_v59 = vmul.f32 %v3233_v29, %v1295_v60 }
 0x983   :  { %v1306_v63 = vmul.f32 %v3981_v32, %v1298_v40 }
 0x9d0   :  { %v1230_v17 = vpop.permute.xlu0 %1229  ;;  %v1228_v35 = vpop.permute.xlu1 %1227 }
 0x9d1   :  { %v1240_v11 = vmul.f32 %v3229_v7, %v1230_v17  ;;  %v1119_v22 = vpop.f32.mrf.mxu1  ;;  %v1239_v33 = vmul.f32 %v3233_v29, %v1228_v35  ;;  %v1297_v17 = vrot.slane %v3926_v21, 7  ;;  %v1270_v35 = vsub.f32 1.0, %v3981_v32 }
 0x9d2   :  { %v1120_v23 = vadd.f32 %v3804_v50, %v1119_v22 }
 0x9d3   :  { %v2982_v4 = vpop.f32.mrf.mxu1  ;;  %1249 = vrot.lane.b32.xlu0 %v1240_v11, %s3560_s6  ;;  %v1269_v11 = vsub.f32 1.0, %v3975_v24 }
 0x9d4   :  { %1133 = vrot.lane.b32.xlu1 %v1120_v23, %s3560_s6  ;;  %v1232_v25 = vpop.permute.xlu1 %1231  ;;  %v1234_v36 = vpop.permute.xlu0 %1233  ;;  %v1125_v34 = vadd.f32 %v1120_v23, %v1073_v20  ;;  %v1305_v23 = vmul.f32 %v3975_v24, %v1297_v17 }
 0x9d5   :  { %v1241_v1 = vmul.f32 %v3975_v24, %v1232_v25  ;;  %v1122_v30 = vpop.f32.mrf.mxu1  ;;  %v1242_v18 = vmul.f32 %v3981_v32, %v1234_v36 }
 0x9d6   :  { %v2783_v41 = vmul.f32 -1.442695, %v1125_v34 }
 0x9d7   :  { %v2983_v39 = vpop.f32.mrf.mxu1  ;;  %1251 = vrot.lane.b32.xlu0 %v1241_v1, %s3560_s6 }
 0x9d8   :  { %1247 = vrot.lane.b32.xlu1 %v1239_v33, %s3560_s6  ;;  %3236 = vpow2.f32 %v2783_v41 }
 0x9dc   :  { %1253 = vrot.lane.b32.xlu1 %v1242_v18, %s3560_s6 }
 0x9e5   :  { %v3237_v37 = vpop.eup %3236 }
 0x9e6   :  { %v1129_v38 = vadd.f32 1.0, %v3237_v37 }
 0x9e8   :  { %3238 = vrcp.f32 %v1129_v38 }
 0x9f5   :  { %v3986_v10 = vpop.eup %3238 }
 0xa45   :  { %v1250_v3 = vpop.permute.xlu0 %1249 }
 0xa46   :  { %v1260_v15 = vadd.f32 %v1250_v3, %v3690_v26  ;;  %v1134_v43 = vpop.permute.xlu1 %1133 }
 0xa47   :  { %v1136_v14 = vmul.f32 %v3986_v10, %v1134_v43 }
 0xa48   :  { %3240 = vtanh.f32 %v1260_v15  ;;  %v1143_v15 = vsub.f32 1.0, %v3986_v10 }
 0xa49   :  { %v1252_v46 = vpop.permute.xlu0 %1251  ;;  %1138 = vrot.lane.b32.xlu0 %v1136_v14, %s3560_s6  ;;  %v1149_v14 = vmul.f32 %v3986_v10, %v3946_v42  ;;  %v4042_v42 = vld [vmem:[#allocation7] sm:$0xff]  }
 0xa4a   :  { %v1248_v47 = vpop.permute.xlu1 %1247  ;;  %v1261_v19 = vadd.f32 %v1252_v46, %v3694_v28  ;;  %v4050_v10 = vld [vmem:[%s4441_s7 + $0x8] sm:$0xff]  }
 0xa4b   :  { %v1259_v9 = vadd.f32 %v1248_v47, %v3692_v27 }
 0xa4d   :  { %3242 = vtanh.f32 %v1259_v9 }
 0xa4e   :  { %v1254_v51 = vpop.permute.xlu1 %1253  ;;  %3244 = vtanh.f32 %v1261_v19 }
 0xa4f   :  { %v1262_v55 = vadd.f32 %v1254_v51, %v3698_v31  ;;  %v4036_v51 = vld [vmem:[#allocation7 + $0x8] sm:$0xff]  }
 0xa51   :  { %3246 = vtanh.f32 %v1262_v55  ;;  %v4059_v55 = vld [vmem:[%s4441_s7] sm:$0xff]  }
 0xa55   :  { %v3241_v8 = vpop.eup %3240 }
 0xa56   :  { %1277 = vrot.lane.b32.xlu0 %v3241_v8, %s3567_s0 }
 0xa5a   :  { %v3243_v56 = vpop.eup %3242 }
 0xa5b   :  { %1275 = vrot.lane.b32.xlu1 %v3243_v56, %s3567_s0  ;;  %v3245_v45 = vpop.eup %3244  ;;  %v4064_v56 = vld [vmem:[#allocation10 + $0x8] sm:$0xff]  }
 0xa5e   :  { %v3247_v13 = vpop.eup %3246 }
 0xa5f   :  { %1279 = vrot.lane.b32.xlu1 %v3245_v45, %s3567_s0  ;;  %1281 = vrot.lane.b32.xlu0 %v3247_v13, %s3567_s0  ;;  %v4070_v45 = vld [vmem:[#allocation10] sm:$0xff]  }
 0xabb   :  { %v1139_v57 = vpop.permute.xlu0 %1138 }
 0xabc   :  { %v1141_v61 = vadd.f32 %v1139_v57, %v1073_v20 }
 0xabe   :  { %3248 = vtanh.f32 %v1141_v61 }
 0xac8   :  { %v1278_v62 = vpop.permute.xlu0 %1277 }
 0xac9   :  { %v1288_v2 = vmul.f32 %v1278_v62, %v1268_v44  ;;  %v4076_v62 = vld [vmem:[#allocation8] ss:$0 sm:$0xff] }
 0xacb   :  { %v3249_v58 = vpop.eup %3248  ;;  %v3999_v49 = vadd.f32 %v1304_v54, %v1288_v2 }
 0xacc   :  { %1145 = vrot.lane.b32.xlu1 %v3249_v58, %s3567_s0 }
 0xacd   :  { %v1276_v5 = vpop.permute.xlu1 %1275  ;;  %v1312_v6 = vpack.c.bf16 %v3999_v49, %v3999_v49 }
 0xace   :  { %v1287_v48 = vmul.f32 %v1276_v5, %v1267_v53 }
 0xacf   :  { %v1320_v25 = vunpack.c.l.b16 %v1312_v6 }
 0xad0   :  { %v4007_v7 = vadd.f32 %v1303_v59, %v1287_v48 }
 0xad1   :  { %v1282_v22 = vpop.permute.xlu0 %1281  ;;  %v1280_v4 = vpop.permute.xlu1 %1279  ;;  %v1324_v36 = vrot.slane %v1320_v25, 2 }
 0xad2   :  { %v1311_v29 = vpack.c.bf16 %v4007_v7, %v4007_v7  ;;  %v1290_v1 = vmul.f32 %v1282_v22, %v1270_v35  ;;  %v1289_v16 = vmul.f32 %v1280_v4, %v1269_v11 }
 0xad4   :  { %v1319_v30 = vunpack.c.l.b16 %v1311_v29  ;;  %v4015_v21 = vadd.f32 %v1306_v63, %v1290_v1  ;;  %v4017_v33 = vadd.f32 %v1305_v23, %v1289_v16 }
 0xad6   :  { %v1323_v39 = vrot.slane %v1319_v30, 3  ;;  %v1313_v32 = vpack.c.bf16 %v4017_v33, %v4017_v33  ;;  %v1314_v24 = vpack.c.bf16 %v4015_v21, %v4015_v21 }
 0xad8   :  { %v1321_v18 = vunpack.c.l.b16 %v1313_v32  ;;  %v1325_v20 = vsel %vm413_vm3, %v1324_v36, %v1323_v39  ;;  %v1322_v41 = vunpack.c.l.b16 %v1314_v24 }
 0xada   :  { %v1326_v34 = vrot.slane %v1321_v18, 1 }
 0xadc   :  { %v1327_v37 = vsel %vm416_vm4, %v1326_v34, %v1325_v20 }
 0xadd   :  { %v1328_v38 = vsel %vm419_vm5, %v1322_v41, %v1327_v37 }
 0xade   :  { %v1329_v3 = vpack.c.b16 %v1328_v38, %v1328_v38 }
 0xae0   :  { %1330 = vrot.lane.b32.xlu0 %v1329_v3, %s3567_s0 }
 0xb3e   :  { %v1146_v43 = vpop.permute.xlu1 %1145 }
 0xb3f   :  { %v1148_v46 = vmul.f32 %v1146_v43, %v1143_v15 }
 0xb41   :  { %v4030_v47 = vadd.f32 %v1149_v14, %v1148_v46 }
 0xb43   :  { %v1375_v9 = vpack.c.bf16 %v4030_v47, %v4030_v47 }
 0xb45   :  { %1377 = vrot.lane.b32.xlu1 %v1375_v9, %s3567_s0 }
 0xb52   :  { %v1331_v19 = vpop.permute.xlu0 %1330 }
 0xb53   :  { %2997 = vmatmul.mubr.msk.bf16.vlgmr.msra.gmra.mxu1 %vm248_vm6, %v1331_v19 }
 0xb54   :  { %3009 = vmatpush3.bf16.msra.mxu1 %v4036_v51  ;;  %3012 = vmatprep.mubr.msk.bf16.mxu1 %vm3565_vm0, %v3564_v0 }
 0xb55   :  { %3010 = vmatprep.subr.bf16.mxu1 %v3564_v0 }
 0xb58   :  { %3011 = vmatpush3.bf16.msra.mxu1 %v4042_v42 }
 0xb59   :  { %3024 = vmatprep.subr.bf16.mxu1 %v3564_v0 }
 0xb5b   :  { %3013 = vmatmul.mubr.msk.bf16.vlgmr.msra.gmra.mxu1 %vm248_vm6, %v1331_v19 }
 0xb5c   :  { %3025 = vmatpush3.bf16.msra.mxu1 %v4050_v10  ;;  %3028 = vmatprep.mubr.msk.bf16.mxu1 %vm3565_vm0, %v3564_v0 }
 0xb5d   :  { %3026 = vmatprep.subr.bf16.mxu1 %v3564_v0 }
 0xb60   :  { %3027 = vmatpush3.bf16.msra.mxu1 %v4059_v55 }
 0xb61   :  { %3040 = vmatprep.subr.bf16.mxu1 %v3564_v0 }
 0xbb7   :  { %v1378_v8 = vpop.permute.xlu1 %1377 }
 0xbb8   :  { %3005 = vmatmul.mubr.msk.bf16.vlgmr.msra.gmra.mxu0 %vm248_vm6, %v1378_v8 }
 0xbb9   :  { %3017 = vmatpush3.bf16.msra.mxu0 %v4064_v56  ;;  %3020 = vmatprep.mubr.msk.bf16.mxu0 %vm3565_vm0, %v3564_v0 }
 0xbba   :  { %3018 = vmatprep.subr.bf16.mxu0 %v3564_v0 }
 0xbbd   :  { %3019 = vmatpush3.bf16.msra.mxu0 %v4070_v45 }
 0xbbe   :  { %3032 = vmatprep.subr.bf16.mxu0 %v3564_v0 }
 0xc13   :  { %v4074_v13 = vpop.f32.mrf.mxu1 }
 0xc15   :  { %v2998_v57 = vpop.f32.mrf.mxu1 }
 0xc16   :  { %v1370_v57 = vadd.f32 %v3810_v52, %v4074_v13 }
 0xc17   :  { %v1372_v61 = vpop.f32.mrf.mxu1 }
 0xc19   :  { %v2999_v12 = vpop.f32.mrf.mxu1 }
 0xc1b   :  { %v1482_v44 = vpop.f32.mrf.mxu1 }
 0xc1c   :  { %v1483_v54 = vadd.f32 %v4076_v62, %v1482_v44 }
 0xc1d   :  { %v3014_v2 = vpop.f32.mrf.mxu1 }
 0xc1e   :  { %v1489_v58 = vrot.slane %v1483_v54, 4  ;;  %v1490_v60 = vrot.slane %v1483_v54, 5  ;;  %v1491_v6 = vrot.slane %v1483_v54, 6  ;;  %v1492_v59 = vrot.slane %v1483_v54, 7 }
 0xc1f   :  { %v1485_v53 = vpop.f32.mrf.mxu1 }
 0xc20   :  { %1525 = vrot.lane.b32.xlu0 %v1489_v58, %s3560_s6  ;;  %1527 = vrot.lane.b32.xlu1 %v1490_v60, %s3560_s6  ;;  %v1497_v48 = vadd.f32 %v1489_v58, %v3692_v27  ;;  %v1498_v40 = vadd.f32 %v1490_v60, %v3690_v26  ;;  %v1499_v35 = vadd.f32 %v1491_v6, %v3694_v28 }
 0xc21   :  { %v3015_v5 = vpop.f32.mrf.mxu1  ;;  %v1500_v63 = vadd.f32 %v1492_v59, %v3698_v31 }
 0xc22   :  { %v2793_v17 = vmul.f32 -1.442695, %v1497_v48  ;;  %v2794_v11 = vmul.f32 -1.442695, %v1498_v40  ;;  %v2795_v22 = vmul.f32 -1.442695, %v1499_v35 }
 0xc23   :  { %v2796_v23 = vmul.f32 -1.442695, %v1500_v63 }
 0xc24   :  { %1529 = vrot.lane.b32.xlu0 %v1491_v6, %s3560_s6  ;;  %1531 = vrot.lane.b32.xlu1 %v1492_v59, %s3560_s6  ;;  %3250 = vpow2.f32 %v2793_v17 }
 0xc25   :  { %3252 = vpow2.f32 %v2794_v11 }
 0xc26   :  { %3254 = vpow2.f32 %v2795_v22 }
 0xc27   :  { %3256 = vpow2.f32 %v2796_v23 }
 0xc31   :  { %v3251_v16 = vpop.eup %3250 }
 0xc32   :  { %v3253_v30 = vpop.eup %3252  ;;  %v1513_v39 = vadd.f32 1.0, %v3251_v16 }
 0xc33   :  { %v3255_v32 = vpop.eup %3254  ;;  %v1514_v24 = vadd.f32 1.0, %v3253_v30 }
 0xc34   :  { %v3257_v18 = vpop.eup %3256  ;;  %3258 = vrcp.f32 %v1513_v39  ;;  %v1515_v20 = vadd.f32 1.0, %v3255_v32 }
 0xc35   :  { %3260 = vrcp.f32 %v1514_v24  ;;  %v1516_v34 = vadd.f32 1.0, %v3257_v18 }
 0xc36   :  { %3262 = vrcp.f32 %v1515_v20  ;;  %v1595_v20 = vrot.slane %v4017_v33, 7 }
 0xc37   :  { %3264 = vrcp.f32 %v1516_v34 }
 0xc41   :  { %v3259_v41 = vpop.eup %3258 }
 0xc42   :  { %v3261_v37 = vpop.eup %3260 }
 0xc43   :  { %v4089_v43 = vpop.eup %3262  ;;  %v1566_v30 = vsub.f32 1.0, %v3261_v37 }
 0xc44   :  { %v4093_v14 = vpop.eup %3264 }
 0xc78   :  { %v1416_v4 = vpop.f32.mrf.mxu0 }
 0xc79   :  { %v1417_v25 = vadd.f32 %v3804_v50, %v1416_v4 }
 0xc7a   :  { %v3006_v29 = vpop.f32.mrf.mxu0 }
 0xc7b   :  { %1430 = vrot.lane.b32.xlu0 %v1417_v25, %s3560_s6  ;;  %v1422_v61 = vadd.f32 %v1417_v25, %v1370_v57  ;;  %v1593_v25 = vrot.slane %v4007_v7, 7  ;;  %v1565_v29 = vsub.f32 1.0, %v3259_v41 }
 0xc7c   :  { %v1419_v1 = vpop.f32.mrf.mxu0 }
 0xc7d   :  { %v2791_v12 = vmul.f32 -1.442695, %v1422_v61  ;;  %v1594_v1 = vrot.slane %v3999_v49, 7  ;;  %v1568_v49 = vsub.f32 1.0, %v4093_v14 }
 0xc7e   :  { %v3007_v36 = vpop.f32.mrf.mxu0 }
 0xc7f   :  { %3266 = vpow2.f32 %v2791_v12  ;;  %v1601_v36 = vmul.f32 %v3259_v41, %v1593_v25  ;;  %v1602_v24 = vmul.f32 %v3261_v37, %v1594_v1 }
 0xc8c   :  { %v3267_v44 = vpop.eup %3266 }
 0xc8d   :  { %v1426_v54 = vadd.f32 1.0, %v3267_v44 }
 0xc8f   :  { %3268 = vrcp.f32 %v1426_v54 }
 0xc92   :  { %v1526_v50 = vpop.permute.xlu0 %1525  ;;  %v1528_v38 = vpop.permute.xlu1 %1527 }
 0xc93   :  { %v1537_v3 = vmul.f32 %v3259_v41, %v1526_v50  ;;  %v1538_v15 = vmul.f32 %v3261_v37, %v1528_v38  ;;  %v1567_v50 = vsub.f32 1.0, %v4089_v43  ;;  %v1596_v38 = vrot.slane %v4015_v21, 7 }
 0xc95   :  { %1545 = vrot.lane.b32.xlu1 %v1537_v3, %s3560_s6  ;;  %1547 = vrot.lane.b32.xlu0 %v1538_v15, %s3560_s6  ;;  %v1603_v15 = vmul.f32 %v4089_v43, %v1595_v20  ;;  %v4178_v20 = vld [vmem:[#allocation13] ss:$0 sm:$0xff] }
 0xc96   :  { %v1530_v46 = vpop.permute.xlu0 %1529  ;;  %v1532_v9 = vpop.permute.xlu1 %1531 }
 0xc97   :  { %v1539_v19 = vmul.f32 %v4089_v43, %v1530_v46  ;;  %v1540_v8 = vmul.f32 %v4093_v14, %v1532_v9  ;;  %v1604_v9 = vmul.f32 %v4093_v14, %v1596_v38 }
 0xc99   :  { %1549 = vrot.lane.b32.xlu1 %v1539_v19, %s3560_s6  ;;  %1551 = vrot.lane.b32.xlu0 %v1540_v8, %s3560_s6 }
 0xc9c   :  { %v4101_v2 = vpop.eup %3268 }
 0xced   :  { %v1431_v58 = vpop.permute.xlu0 %1430 }
 0xcee   :  { %v1433_v60 = vmul.f32 %v4101_v2, %v1431_v58 }
 0xcf0   :  { %1435 = vrot.lane.b32.xlu1 %v1433_v60, %s3560_s6 }
 0xd07   :  { %v1546_v53 = vpop.permute.xlu1 %1545  ;;  %v1548_v5 = vpop.permute.xlu0 %1547 }
 0xd08   :  { %v1557_v6 = vadd.f32 %v1546_v53, %v3692_v27  ;;  %v1558_v59 = vadd.f32 %v1548_v5, %v3690_v26 }
 0xd0a   :  { %3270 = vtanh.f32 %v1557_v6 }
 0xd0b   :  { %3272 = vtanh.f32 %v1558_v59  ;;  %v1550_v52 = vpop.permute.xlu1 %1549  ;;  %v1552_v13 = vpop.permute.xlu0 %1551 }
 0xd0c   :  { %v1559_v48 = vadd.f32 %v1550_v52, %v3694_v28  ;;  %v1560_v40 = vadd.f32 %v1552_v13, %v3698_v31  ;;  %v1440_v13 = vsub.f32 1.0, %v4101_v2 }
 0xd0e   :  { %3274 = vtanh.f32 %v1559_v48 }
 0xd0f   :  { %3276 = vtanh.f32 %v1560_v40  ;;  %v1446_v40 = vmul.f32 %v4101_v2, %v4030_v47 }
 0xd17   :  { %v3271_v17 = vpop.eup %3270 }
 0xd18   :  { %v3273_v35 = vpop.eup %3272  ;;  %1573 = vrot.lane.b32.xlu0 %v3271_v17, %s3567_s0 }
 0xd19   :  { %1575 = vrot.lane.b32.xlu1 %v3273_v35, %s3567_s0 }
 0xd1b   :  { %v3275_v11 = vpop.eup %3274 }
 0xd1c   :  { %v3277_v63 = vpop.eup %3276  ;;  %1577 = vrot.lane.b32.xlu0 %v3275_v11, %s3567_s0 }
 0xd1d   :  { %1579 = vrot.lane.b32.xlu1 %v3277_v63, %s3567_s0 }
 0xd62   :  { %v1436_v22 = vpop.permute.xlu1 %1435 }
 0xd63   :  { %v1438_v23 = vadd.f32 %v1436_v22, %v1370_v57 }
 0xd65   :  { %3278 = vtanh.f32 %v1438_v23 }
 0xd72   :  { %v3279_v4 = vpop.eup %3278 }
 0xd73   :  { %1442 = vrot.lane.b32.xlu0 %v3279_v4, %s3567_s0 }
 0xd8a   :  { %v1574_v16 = vpop.permute.xlu0 %1573 }
 0xd8b   :  { %v1585_v39 = vmul.f32 %v1574_v16, %v1565_v29  ;;  %v1576_v32 = vpop.permute.xlu1 %1575 }
 0xd8c   :  { %v1586_v18 = vmul.f32 %v1576_v32, %v1566_v30 }
 0xd8d   :  { %v4117_v34 = vadd.f32 %v1601_v36, %v1585_v39 }
 0xd8e   :  { %v4121_v3 = vadd.f32 %v1602_v24, %v1586_v18  ;;  %v1578_v7 = vpop.permute.xlu0 %1577 }
 0xd8f   :  { %v1609_v41 = vpack.c.bf16 %v4117_v34, %v4117_v34  ;;  %v1587_v37 = vmul.f32 %v1578_v7, %v1567_v50  ;;  %v1580_v46 = vpop.permute.xlu1 %1579 }
 0xd90   :  { %v1610_v33 = vpack.c.bf16 %v4121_v3, %v4121_v3  ;;  %v1588_v19 = vmul.f32 %v1580_v46, %v1568_v49 }
 0xd91   :  { %v1617_v8 = vunpack.c.l.b16 %v1609_v41  ;;  %v4130_v21 = vadd.f32 %v1603_v15, %v1587_v37 }
 0xd92   :  { %v1618_v57 = vunpack.c.l.b16 %v1610_v33  ;;  %v4132_v61 = vadd.f32 %v1604_v9, %v1588_v19 }
 0xd93   :  { %v1621_v12 = vrot.slane %v1617_v8, 4  ;;  %v1611_v44 = vpack.c.bf16 %v4130_v21, %v4130_v21 }
 0xd94   :  { %v1622_v54 = vrot.slane %v1618_v57, 3  ;;  %v1612_v43 = vpack.c.bf16 %v4132_v61, %v4132_v61 }
 0xd95   :  { %v1619_v58 = vunpack.c.l.b16 %v1611_v44 }
 0xd96   :  { %v1620_v60 = vunpack.c.l.b16 %v1612_v43  ;;  %v1623_v53 = vsel %vm413_vm3, %v1622_v54, %v1621_v12 }
 0xd97   :  { %v1624_v14 = vrot.slane %v1619_v58, 2 }
 0xd98   :  { %v1626_v5 = vrot.slane %v1620_v60, 1 }
 0xd99   :  { %v1625_v6 = vsel %vm416_vm4, %v1624_v14, %v1623_v53 }
 0xd9a   :  { %v1627_v59 = vsel %vm419_vm5, %v1626_v5, %v1625_v6 }
 0xd9b   :  { %v1628_v52 = vpack.c.b16 %v1627_v59, %v1627_v59 }
 0xd9d   :  { %1629 = vrot.lane.b32.xlu1 %v1628_v52, %s3567_s0 }
 0xde5   :  { %v1443_v48 = vpop.permute.xlu0 %1442 }
 0xde6   :  { %v1445_v17 = vmul.f32 %v1443_v48, %v1440_v13 }
 0xde8   :  { %v4145_v35 = vadd.f32 %v1446_v40, %v1445_v17 }
 0xdea   :  { %v1674_v11 = vpack.c.bf16 %v4145_v35, %v4145_v35 }
 0xdec   :  { %1676 = vrot.lane.b32.xlu0 %v1674_v11, %s3567_s0 }
 0xe0f   :  { %v1630_v63 = vpop.permute.xlu1 %1629 }
 0xe10   :  { %3021 = vmatmul.mubr.msk.bf16.vlgmr.msra.gmra.mxu0 %vm248_vm6, %v1630_v63 }
 0xe11   :  { %3033 = vmatpush3.bf16.msra.mxu0 %v4036_v51  ;;  %3036 = vmatprep.mubr.msk.bf16.mxu0 %vm3565_vm0, %v3564_v0 }
 0xe12   :  { %3034 = vmatprep.subr.bf16.mxu0 %v3564_v0 }
 0xe15   :  { %3035 = vmatpush3.bf16.msra.mxu0 %v4042_v42 }
 0xe16   :  { %3048 = vmatprep.subr.bf16.mxu0 %v3564_v0 }
 0xe18   :  { %3037 = vmatmul.mubr.msk.bf16.vlgmr.msra.gmra.mxu0 %vm248_vm6, %v1630_v63 }
 0xe19   :  { %3049 = vmatpush3.bf16.msra.mxu0 %v4050_v10  ;;  %3052 = vmatprep.mubr.msk.bf16.mxu0 %vm3565_vm0, %v3564_v0 }
 0xe1a   :  { %3050 = vmatprep.subr.bf16.mxu0 %v3564_v0 }
 0xe1d   :  { %3051 = vmatpush3.bf16.msra.mxu0 %v4059_v55 }
 0xe1e   :  { %3064 = vmatprep.subr.bf16.mxu0 %v3564_v0 }
 0xe5e   :  { %v1677_v47 = vpop.permute.xlu0 %1676 }
 0xe5f   :  { %3029 = vmatmul.mubr.msk.bf16.vlgmr.msra.gmra.mxu1 %vm248_vm6, %v1677_v47 }
 0xe60   :  { %3041 = vmatpush3.bf16.msra.mxu1 %v4064_v56  ;;  %3044 = vmatprep.mubr.msk.bf16.mxu1 %vm3565_vm0, %v3564_v0 }
 0xe61   :  { %3042 = vmatprep.subr.bf16.mxu1 %v3564_v0 }
 0xe64   :  { %3043 = vmatpush3.bf16.msra.mxu1 %v4070_v45 }
 0xe65   :  { %3056 = vmatprep.subr.bf16.mxu1 %v3564_v0 }
 0xed0   :  { %v4171_v2 = vpop.f32.mrf.mxu0 }
 0xed2   :  { %v3022_v22 = vpop.f32.mrf.mxu0 }
 0xed3   :  { %v4196_v22 = vld [vmem:[#allocation11] ss:$0 sm:$0xff] }
 0xed4   :  { %v1671_v23 = vpop.f32.mrf.mxu0 }
 0xed5   :  { %v1669_v23 = vadd.f32 %v4196_v22, %v4171_v2 }
 0xed6   :  { %v3023_v4 = vpop.f32.mrf.mxu0 }
 0xed8   :  { %v1781_v25 = vpop.f32.mrf.mxu0 }
 0xed9   :  { %v1782_v29 = vadd.f32 %v4076_v62, %v1781_v25 }
 0xeda   :  { %v3038_v1 = vpop.f32.mrf.mxu0 }
 0xedb   :  { %v1789_v16 = vrot.slane %v1782_v29, 4  ;;  %v1788_v30 = vrot.slane %v1782_v29, 3  ;;  %v1791_v32 = vrot.slane %v1782_v29, 6  ;;  %v1790_v24 = vrot.slane %v1782_v29, 5 }
 0xedc   :  { %v1784_v36 = vpop.f32.mrf.mxu0 }
 0xedd   :  { %1826 = vrot.lane.b32.xlu0 %v1789_v16, %s3560_s6  ;;  %1824 = vrot.lane.b32.xlu1 %v1788_v30, %s3560_s6  ;;  %v1797_v49 = vadd.f32 %v1789_v16, %v3690_v26  ;;  %v1796_v15 = vadd.f32 %v1788_v30, %v3692_v27  ;;  %v1799_v46 = vadd.f32 %v1791_v32, %v3698_v31 }
 0xede   :  { %v3039_v39 = vpop.f32.mrf.mxu0  ;;  %v1798_v9 = vadd.f32 %v1790_v24, %v3694_v28 }
 0xedf   :  { %v2802_v37 = vmul.f32 -1.442695, %v1797_v49  ;;  %v2801_v33 = vmul.f32 -1.442695, %v1796_v15  ;;  %v2804_v19 = vmul.f32 -1.442695, %v1799_v46 }
 0xee0   :  { %v2803_v8 = vmul.f32 -1.442695, %v1798_v9 }
 0xee1   :  { %1830 = vrot.lane.b32.xlu0 %v1791_v32, %s3560_s6  ;;  %1828 = vrot.lane.b32.xlu1 %v1790_v24, %s3560_s6  ;;  %3280 = vpow2.f32 %v2802_v37 }
 0xee2   :  { %3282 = vpow2.f32 %v2801_v33 }
 0xee3   :  { %3284 = vpow2.f32 %v2804_v19  ;;  %v1893_v19 = vrot.slane %v4121_v3, 7 }
 0xee4   :  { %3286 = vpow2.f32 %v2803_v8 }
 0xeee   :  { %v3281_v57 = vpop.eup %3280 }
 0xeef   :  { %v3283_v12 = vpop.eup %3282  ;;  %v1813_v44 = vadd.f32 1.0, %v3281_v57  ;;  %v1892_v57 = vrot.slane %v4117_v34, 7 }
 0xef0   :  { %v3285_v54 = vpop.eup %3284  ;;  %v1812_v43 = vadd.f32 1.0, %v3283_v12 }
 0xef1   :  { %v3287_v58 = vpop.eup %3286  ;;  %3288 = vrcp.f32 %v1813_v44  ;;  %v1815_v60 = vadd.f32 1.0, %v3285_v54 }
 0xef2   :  { %3290 = vrcp.f32 %v1812_v43  ;;  %v1814_v53 = vadd.f32 1.0, %v3287_v58 }
 0xef3   :  { %3292 = vrcp.f32 %v1815_v60 }
 0xef4   :  { %3294 = vrcp.f32 %v1814_v53 }
 0xefe   :  { %v3289_v14 = vpop.eup %3288 }
 0xeff   :  { %v3291_v5 = vpop.eup %3290  ;;  %v1865_v8 = vsub.f32 1.0, %v3289_v14  ;;  %v1901_v43 = vmul.f32 %v3289_v14, %v1893_v19 }
 0xf00   :  { %v4186_v48 = vpop.eup %3292  ;;  %v1864_v12 = vsub.f32 1.0, %v3291_v5  ;;  %v1900_v60 = vmul.f32 %v3291_v5, %v1892_v57 }
 0xf01   :  { %v4190_v40 = vpop.eup %3294 }
 0xf02   :  { %v1866_v3 = vsub.f32 1.0, %v4190_v40 }
 0xf1f   :  { %v1715_v18 = vpop.f32.mrf.mxu1 }
 0xf20   :  { %v1716_v50 = vadd.f32 %v4178_v20, %v1715_v18 }
 0xf21   :  { %v3030_v38 = vpop.f32.mrf.mxu1 }
 0xf22   :  { %1729 = vrot.lane.b32.xlu1 %v1716_v50, %s3560_s6  ;;  %v1721_v4 = vadd.f32 %v1716_v50, %v1669_v23 }
 0xf23   :  { %v1718_v7 = vpop.f32.mrf.mxu1 }
 0xf24   :  { %v2799_v25 = vmul.f32 -1.442695, %v1721_v4 }
 0xf25   :  { %v3031_v41 = vpop.f32.mrf.mxu1 }
 0xf26   :  { %3296 = vpow2.f32 %v2799_v25 }
 0xf33   :  { %v3297_v29 = vpop.eup %3296 }
 0xf34   :  { %v1725_v1 = vadd.f32 1.0, %v3297_v29 }
 0xf36   :  { %3298 = vrcp.f32 %v1725_v1 }
 0xf43   :  { %v4200_v16 = vpop.eup %3298 }
 0xf4f   :  { %v1827_v6 = vpop.permute.xlu0 %1826  ;;  %v1825_v59 = vpop.permute.xlu1 %1824 }
 0xf50   :  { %v1837_v52 = vmul.f32 %v3289_v14, %v1827_v6  ;;  %v1836_v13 = vmul.f32 %v3291_v5, %v1825_v59  ;;  %v1895_v6 = vrot.slane %v4132_v61, 7 }
 0xf52   :  { %1846 = vrot.lane.b32.xlu1 %v1837_v52, %s3560_s6  ;;  %1844 = vrot.lane.b32.xlu0 %v1836_v13, %s3560_s6  ;;  %v1867_v52 = vsub.f32 1.0, %v4186_v48  ;;  %v1894_v13 = vrot.slane %v4130_v21, 7  ;;  %v1903_v5 = vmul.f32 %v4186_v48, %v1895_v6 }
 0xf53   :  { %v1831_v17 = vpop.permute.xlu0 %1830  ;;  %v1829_v11 = vpop.permute.xlu1 %1828 }
 0xf54   :  { %v1839_v63 = vmul.f32 %v4186_v48, %v1831_v17  ;;  %v1838_v47 = vmul.f32 %v4190_v40, %v1829_v11 }
 0xf56   :  { %1850 = vrot.lane.b32.xlu1 %v1839_v63, %s3560_s6  ;;  %1848 = vrot.lane.b32.xlu0 %v1838_v47, %s3560_s6  ;;  %v1902_v47 = vmul.f32 %v4190_v40, %v1894_v13 }
 0xf94   :  { %v1730_v30 = vpop.permute.xlu1 %1729 }
 0xf95   :  { %v1732_v36 = vmul.f32 %v4200_v16, %v1730_v30 }
 0xf97   :  { %1734 = vrot.lane.b32.xlu0 %v1732_v36, %s3560_s6 }
 0xfc4   :  { %v1847_v39 = vpop.permute.xlu1 %1846  ;;  %v1845_v32 = vpop.permute.xlu0 %1844 }
 0xfc5   :  { %v1857_v24 = vadd.f32 %v1847_v39, %v3690_v26  ;;  %v1856_v18 = vadd.f32 %v1845_v32, %v3692_v27 }
 0xfc7   :  { %3300 = vtanh.f32 %v1857_v24 }
 0xfc8   :  { %3302 = vtanh.f32 %v1856_v18  ;;  %v1851_v2 = vpop.permute.xlu1 %1850  ;;  %v1849_v50 = vpop.permute.xlu0 %1848 }
 0xfc9   :  { %v1859_v38 = vadd.f32 %v1851_v2, %v3698_v31  ;;  %v1858_v7 = vadd.f32 %v1849_v50, %v3694_v28 }
 0xfcb   :  { %3304 = vtanh.f32 %v1859_v38 }
 0xfcc   :  { %3306 = vtanh.f32 %v1858_v7  ;;  %v1739_v7 = vsub.f32 1.0, %v4200_v16 }
 0xfd4   :  { %v3301_v49 = vpop.eup %3300 }
 0xfd5   :  { %v3303_v41 = vpop.eup %3302  ;;  %1874 = vrot.lane.b32.xlu0 %v3301_v49, %s3567_s0 }
 0xfd6   :  { %1872 = vrot.lane.b32.xlu1 %v3303_v41, %s3567_s0  ;;  %v1745_v41 = vmul.f32 %v4200_v16, %v4145_v35 }
 0xfd8   :  { %v3305_v15 = vpop.eup %3304 }
 0xfd9   :  { %v3307_v37 = vpop.eup %3306  ;;  %1878 = vrot.lane.b32.xlu0 %v3305_v15, %s3567_s0 }
 0xfda   :  { %1876 = vrot.lane.b32.xlu1 %v3307_v37, %s3567_s0 }
0x1009   :  { %v1735_v46 = vpop.permute.xlu0 %1734 }
0x100a   :  { %v1737_v33 = vadd.f32 %v1735_v46, %v1669_v23 }
0x100c   :  { %3308 = vtanh.f32 %v1737_v33 }
0x1019   :  { %v3309_v9 = vpop.eup %3308 }
0x101a   :  { %1741 = vrot.lane.b32.xlu1 %v3309_v9, %s3567_s0 }
0x1047   :  { %v1875_v44 = vpop.permute.xlu0 %1874 }
0x1048   :  { %v1873_v54 = vpop.permute.xlu1 %1872  ;;  %v1885_v58 = vmul.f32 %v1875_v44, %v1865_v8 }
0x1049   :  { %v1884_v53 = vmul.f32 %v1873_v54, %v1864_v12 }
0x104a   :  { %v4216_v59 = vadd.f32 %v1901_v43, %v1885_v58 }
0x104b   :  { %v4220_v17 = vadd.f32 %v1900_v60, %v1884_v53  ;;  %v1879_v34 = vpop.permute.xlu0 %1878 }
0x104c   :  { %v1909_v11 = vpack.c.bf16 %v4216_v59, %v4216_v59  ;;  %v1877_v14 = vpop.permute.xlu1 %1876  ;;  %v1887_v63 = vmul.f32 %v1879_v34, %v1867_v52 }
0x104d   :  { %v1908_v61 = vpack.c.bf16 %v4220_v17, %v4220_v17  ;;  %v1886_v23 = vmul.f32 %v1877_v14, %v1866_v3 }
0x104e   :  { %v1917_v4 = vunpack.c.l.b16 %v1909_v11  ;;  %v4229_v21 = vadd.f32 %v1903_v5, %v1887_v63 }
0x104f   :  { %v1916_v25 = vunpack.c.l.b16 %v1908_v61  ;;  %v4231_v29 = vadd.f32 %v1902_v47, %v1886_v23 }
0x1050   :  { %v1921_v1 = vrot.slane %v1917_v4, 4  ;;  %v1911_v30 = vpack.c.bf16 %v4229_v21, %v4229_v21 }
0x1051   :  { %v1920_v36 = vrot.slane %v1916_v25, 5  ;;  %v1910_v48 = vpack.c.bf16 %v4231_v29, %v4231_v29 }
0x1052   :  { %v1919_v39 = vunpack.c.l.b16 %v1911_v30 }
0x1053   :  { %v1918_v32 = vunpack.c.l.b16 %v1910_v48  ;;  %v1922_v24 = vsel %vm413_vm3, %v1921_v1, %v1920_v36 }
0x1054   :  { %v1925_v40 = vrot.slane %v1919_v39, 2 }
0x1055   :  { %v1923_v18 = vrot.slane %v1918_v32, 3 }
0x1057   :  { %v1924_v2 = vsel %vm416_vm4, %v1923_v18, %v1922_v24 }
0x1058   :  { %v1926_v50 = vsel %vm419_vm5, %v1925_v40, %v1924_v2 }
0x1059   :  { %v1927_v38 = vpack.c.b16 %v1926_v50, %v1926_v50 }
0x105b   :  { %1928 = vrot.lane.b32.xlu0 %v1927_v38, %s3567_s0 }
0x108c   :  { %v1742_v49 = vpop.permute.xlu1 %1741 }
0x108d   :  { %v1744_v15 = vmul.f32 %v1742_v49, %v1739_v7 }
0x108f   :  { %v4244_v37 = vadd.f32 %v1745_v41, %v1744_v15 }
0x1091   :  { %v1973_v46 = vpack.c.bf16 %v4244_v37, %v4244_v37 }
0x1093   :  { %1975 = vrot.lane.b32.xlu1 %v1973_v46, %s3567_s0 }
0x10cd   :  { %v1929_v33 = vpop.permute.xlu0 %1928 }
0x10ce   :  { %3045 = vmatmul.mubr.msk.bf16.vlgmr.msra.gmra.mxu1 %vm248_vm6, %v1929_v33 }
0x10cf   :  { %3057 = vmatpush3.bf16.msra.mxu1 %v4036_v51  ;;  %3060 = vmatprep.mubr.msk.bf16.mxu1 %vm3565_vm0, %v3564_v0 }
0x10d0   :  { %3058 = vmatprep.subr.bf16.mxu1 %v3564_v0 }
0x10d3   :  { %3059 = vmatpush3.bf16.msra.mxu1 %v4042_v42 }
0x10d4   :  { %3072 = vmatprep.subr.bf16.mxu1 %v3564_v0 }
0x10d6   :  { %3061 = vmatmul.mubr.msk.bf16.vlgmr.msra.gmra.mxu1 %vm248_vm6, %v1929_v33 }
0x10d7   :  { %3073 = vmatpush3.bf16.msra.mxu1 %v4050_v10  ;;  %3076 = vmatprep.mubr.msk.bf16.mxu1 %vm3565_vm0, %v3564_v0 }
0x10d8   :  { %3074 = vmatprep.subr.bf16.mxu1 %v3564_v0 }
0x10db   :  { %3075 = vmatpush3.bf16.msra.mxu1 %v4059_v55 }
0x10dc   :  { %3088 = vmatprep.subr.bf16.mxu1 %v3564_v0 }
0x1105   :  { %v1976_v35 = vpop.permute.xlu1 %1975 }
0x1106   :  { %3053 = vmatmul.mubr.msk.bf16.vlgmr.msra.gmra.mxu0 %vm248_vm6, %v1976_v35 }
0x1107   :  { %3065 = vmatpush3.bf16.msra.mxu0 %v4064_v56  ;;  %3068 = vmatprep.mubr.msk.bf16.mxu0 %vm3565_vm0, %v3564_v0 }
0x1108   :  { %3066 = vmatprep.subr.bf16.mxu0 %v3564_v0 }
0x110b   :  { %3067 = vmatpush3.bf16.msra.mxu0 %v4070_v45 }
0x110c   :  { %3080 = vmatprep.subr.bf16.mxu0 %v3564_v0 }
0x118e   :  { %v1967_v16 = vpop.f32.mrf.mxu1 }
0x118f   :  { %v1968_v15 = vadd.f32 %v4196_v22, %v1967_v16 }
0x1190   :  { %v3046_v9 = vpop.f32.mrf.mxu1 }
0x1192   :  { %v1970_v19 = vpop.f32.mrf.mxu1 }
0x1194   :  { %v3047_v8 = vpop.f32.mrf.mxu1 }
0x1196   :  { %v2080_v57 = vpop.f32.mrf.mxu1 }
0x1197   :  { %v2081_v12 = vadd.f32 %v4076_v62, %v2080_v57 }
0x1198   :  { %v3062_v44 = vpop.f32.mrf.mxu1 }
0x1199   :  { %v2088_v54 = vrot.slane %v2081_v12, 3  ;;  %v2087_v43 = vrot.slane %v2081_v12, 2  ;;  %v2090_v53 = vrot.slane %v2081_v12, 5  ;;  %v2089_v6 = vrot.slane %v2081_v12, 4 }
0x119a   :  { %v2083_v58 = vpop.f32.mrf.mxu1 }
0x119b   :  { %2125 = vrot.lane.b32.xlu1 %v2088_v54, %s3560_s6  ;;  %2123 = vrot.lane.b32.xlu0 %v2087_v43, %s3560_s6  ;;  %v2096_v14 = vadd.f32 %v2088_v54, %v3690_v26  ;;  %v2095_v5 = vadd.f32 %v2087_v43, %v3692_v27  ;;  %v2098_v61 = vadd.f32 %v2090_v53, %v3698_v31 }
0x119c   :  { %v3063_v60 = vpop.f32.mrf.mxu1  ;;  %v2097_v23 = vadd.f32 %v2089_v6, %v3694_v28 }
0x119d   :  { %v2810_v63 = vmul.f32 -1.442695, %v2096_v14  ;;  %v2809_v47 = vmul.f32 -1.442695, %v2095_v5  ;;  %v2812_v4 = vmul.f32 -1.442695, %v2098_v61 }
0x119e   :  { %v2811_v25 = vmul.f32 -1.442695, %v2097_v23 }
0x119f   :  { %2129 = vrot.lane.b32.xlu1 %v2090_v53, %s3560_s6  ;;  %2127 = vrot.lane.b32.xlu0 %v2089_v6, %s3560_s6  ;;  %3310 = vpow2.f32 %v2810_v63 }
0x11a0   :  { %3312 = vpow2.f32 %v2809_v47 }
0x11a1   :  { %3314 = vpow2.f32 %v2812_v4  ;;  %v2191_v4 = vrot.slane %v4220_v17, 7 }
0x11a2   :  { %3316 = vpow2.f32 %v2811_v25 }
0x11ac   :  { %v3311_v1 = vpop.eup %3310 }
0x11ad   :  { %v3313_v30 = vpop.eup %3312  ;;  %v2112_v36 = vadd.f32 1.0, %v3311_v1  ;;  %v2192_v1 = vrot.slane %v4216_v59, 7 }
0x11ae   :  { %v3315_v48 = vpop.eup %3314  ;;  %v2111_v39 = vadd.f32 1.0, %v3313_v30 }
0x11af   :  { %v3317_v32 = vpop.eup %3316  ;;  %3318 = vrcp.f32 %v2112_v36  ;;  %v2114_v24 = vadd.f32 1.0, %v3315_v48 }
0x11b0   :  { %3320 = vrcp.f32 %v2111_v39  ;;  %v2113_v40 = vadd.f32 1.0, %v3317_v32 }
0x11b1   :  { %3322 = vrcp.f32 %v2114_v24 }
0x11b2   :  { %3324 = vrcp.f32 %v2113_v40 }
0x11bc   :  { %v3319_v18 = vpop.eup %3318 }
0x11bd   :  { %v3321_v2 = vpop.eup %3320  ;;  %v2164_v36 = vsub.f32 1.0, %v3319_v18  ;;  %v2200_v24 = vmul.f32 %v3319_v18, %v2192_v1 }
0x11be   :  { %v4281_v41 = vpop.eup %3322  ;;  %v2163_v25 = vsub.f32 1.0, %v3321_v2  ;;  %v2199_v48 = vmul.f32 %v3321_v2, %v2191_v4 }
0x11bf   :  { %v3325_v46 = vpop.eup %3324 }
0x11c6   :  { %v2014_v52 = vpop.f32.mrf.mxu0 }
0x11c7   :  { %v2015_v13 = vadd.f32 %v4178_v20, %v2014_v52 }
0x11c8   :  { %v3054_v3 = vpop.f32.mrf.mxu0 }
0x11c9   :  { %2028 = vrot.lane.b32.xlu0 %v2015_v13, %s3560_s6  ;;  %v2020_v9 = vadd.f32 %v2015_v13, %v1968_v15 }
0x11ca   :  { %v2017_v34 = vpop.f32.mrf.mxu0 }
0x11cb   :  { %v2807_v57 = vmul.f32 -1.442695, %v2020_v9 }
0x11cc   :  { %v3055_v11 = vpop.f32.mrf.mxu0 }
0x11cd   :  { %3326 = vpow2.f32 %v2807_v57 }
0x11da   :  { %v3327_v12 = vpop.eup %3326 }
0x11db   :  { %v2024_v44 = vadd.f32 1.0, %v3327_v12 }
0x11dd   :  { %3328 = vrcp.f32 %v2024_v44 }
0x11ea   :  { %v4289_v16 = vpop.eup %3328 }
0x120d   :  { %v2126_v50 = vpop.permute.xlu1 %2125  ;;  %v2124_v38 = vpop.permute.xlu0 %2123 }
0x120e   :  { %v2136_v7 = vmul.f32 %v3319_v18, %v2126_v50  ;;  %v2135_v49 = vmul.f32 %v3321_v2, %v2124_v38  ;;  %v2193_v50 = vrot.slane %v4231_v29, 7 }
0x1210   :  { %2143 = vrot.lane.b32.xlu1 %v2135_v49, %s3560_s6  ;;  %2145 = vrot.lane.b32.xlu0 %v2136_v7, %s3560_s6  ;;  %v2165_v7 = vsub.f32 1.0, %v3325_v46  ;;  %v2194_v49 = vrot.slane %v4229_v21, 7  ;;  %v2201_v2 = vmul.f32 %v3325_v46, %v2193_v50 }
0x1211   :  { %v2130_v33 = vpop.permute.xlu1 %2129  ;;  %v2128_v35 = vpop.permute.xlu0 %2127 }
0x1212   :  { %v2138_v19 = vmul.f32 %v4281_v41, %v2130_v33  ;;  %v2137_v8 = vmul.f32 %v3325_v46, %v2128_v35  ;;  %v2166_v33 = vsub.f32 1.0, %v4281_v41  ;;  %v2202_v29 = vmul.f32 %v4281_v41, %v2194_v49 }
0x1214   :  { %2147 = vrot.lane.b32.xlu1 %v2137_v8, %s3560_s6  ;;  %2149 = vrot.lane.b32.xlu0 %v2138_v19, %s3560_s6 }
0x123b   :  { %v2029_v54 = vpop.permute.xlu0 %2028 }
0x123c   :  { %v2031_v43 = vmul.f32 %v4289_v16, %v2029_v54 }
0x123e   :  { %2033 = vrot.lane.b32.xlu1 %v2031_v43, %s3560_s6 }
0x1282   :  { %v2144_v58 = vpop.permute.xlu1 %2143  ;;  %v2146_v60 = vpop.permute.xlu0 %2145 }
0x1283   :  { %v2155_v53 = vadd.f32 %v2144_v58, %v3692_v27  ;;  %v2156_v6 = vadd.f32 %v2146_v60, %v3690_v26 }
0x1285   :  { %3330 = vtanh.f32 %v2155_v53 }
0x1286   :  { %3332 = vtanh.f32 %v2156_v6  ;;  %v2148_v52 = vpop.permute.xlu1 %2147  ;;  %v2150_v13 = vpop.permute.xlu0 %2149 }
0x1287   :  { %v2157_v3 = vadd.f32 %v2148_v52, %v3694_v28  ;;  %v2158_v34 = vadd.f32 %v2150_v13, %v3698_v31 }
0x1289   :  { %3334 = vtanh.f32 %v2157_v3 }
0x128a   :  { %3336 = vtanh.f32 %v2158_v34  ;;  %v2038_v34 = vsub.f32 1.0, %v4289_v16 }
0x1292   :  { %v3331_v11 = vpop.eup %3330 }
0x1293   :  { %v3333_v14 = vpop.eup %3332  ;;  %2171 = vrot.lane.b32.xlu0 %v3331_v11, %s3567_s0 }
0x1294   :  { %2173 = vrot.lane.b32.xlu1 %v3333_v14, %s3567_s0  ;;  %v2044_v14 = vmul.f32 %v4289_v16, %v4244_v37 }
0x1296   :  { %v3335_v5 = vpop.eup %3334 }
0x1297   :  { %v3337_v63 = vpop.eup %3336  ;;  %2175 = vrot.lane.b32.xlu0 %v3335_v5, %s3567_s0 }
0x1298   :  { %2177 = vrot.lane.b32.xlu1 %v3337_v63, %s3567_s0 }
0x12b0   :  { %v2034_v61 = vpop.permute.xlu1 %2033 }
0x12b1   :  { %v2036_v47 = vadd.f32 %v2034_v61, %v1968_v15 }
0x12b3   :  { %3338 = vtanh.f32 %v2036_v47 }
0x12c0   :  { %v3339_v23 = vpop.eup %3338 }
0x12c1   :  { %2040 = vrot.lane.b32.xlu0 %v3339_v23, %s3567_s0 }
0x1305   :  { %v2172_v30 = vpop.permute.xlu0 %2171 }
0x1306   :  { %v2183_v39 = vmul.f32 %v2172_v30, %v2163_v25  ;;  %v2174_v32 = vpop.permute.xlu1 %2173 }
0x1307   :  { %v2184_v40 = vmul.f32 %v2174_v32, %v2164_v36 }
0x1308   :  { %v4305_v38 = vadd.f32 %v2199_v48, %v2183_v39 }
0x1309   :  { %v4308_v15 = vadd.f32 %v2200_v24, %v2184_v40  ;;  %v2176_v17 = vpop.permute.xlu0 %2175 }
0x130a   :  { %v2207_v59 = vpack.c.bf16 %v4305_v38, %v4305_v38  ;;  %v2185_v35 = vmul.f32 %v2176_v17, %v2165_v7  ;;  %v2178_v9 = vpop.permute.xlu1 %2177 }
0x130b   :  { %v2208_v18 = vpack.c.bf16 %v4308_v15, %v4308_v15  ;;  %v2186_v19 = vmul.f32 %v2178_v9, %v2166_v33 }
0x130c   :  { %v2215_v8 = vunpack.c.l.b16 %v2207_v59  ;;  %v4316_v57 = vadd.f32 %v2201_v2, %v2185_v35 }
0x130d   :  { %v2216_v21 = vunpack.c.l.b16 %v2208_v18  ;;  %v4318_v12 = vadd.f32 %v2202_v29, %v2186_v19 }
0x130e   :  { %v2219_v44 = vrot.slane %v2215_v8, 6  ;;  %v2209_v54 = vpack.c.bf16 %v4316_v57, %v4316_v57 }
0x130f   :  { %v2220_v43 = vrot.slane %v2216_v21, 5  ;;  %v2210_v46 = vpack.c.bf16 %v4318_v12, %v4318_v12 }
0x1310   :  { %v2217_v58 = vunpack.c.l.b16 %v2209_v54 }
0x1311   :  { %v2221_v60 = vsel %vm413_vm3, %v2220_v43, %v2219_v44  ;;  %v2218_v53 = vunpack.c.l.b16 %v2210_v46 }
0x1312   :  { %v2222_v41 = vrot.slane %v2217_v58, 4 }
0x1313   :  { %v2224_v6 = vrot.slane %v2218_v53, 3 }
0x1314   :  { %v2223_v52 = vsel %vm416_vm4, %v2222_v41, %v2221_v60 }
0x1315   :  { %v2225_v13 = vsel %vm419_vm5, %v2224_v6, %v2223_v52 }
0x1316   :  { %v2226_v3 = vpack.c.b16 %v2225_v13, %v2225_v13 }
0x1318   :  { %2227 = vrot.lane.b32.xlu0 %v2226_v3, %s3567_s0 }
0x1333   :  { %v2041_v11 = vpop.permute.xlu0 %2040 }
0x1334   :  { %v2043_v5 = vmul.f32 %v2041_v11, %v2038_v34 }
0x1336   :  { %v4331_v63 = vadd.f32 %v2044_v14, %v2043_v5 }
0x1338   :  { %v2272_v61 = vpack.c.bf16 %v4331_v63, %v4331_v63 }
0x133a   :  { %2274 = vrot.lane.b32.xlu1 %v2272_v61, %s3567_s0 }
0x138a   :  { %v2228_v47 = vpop.permute.xlu0 %2227 }
0x138b   :  { %3069 = vmatmul.mubr.msk.bf16.vlgmr.msra.gmra.mxu0 %vm248_vm6, %v2228_v47 }
0x138c   :  { %3081 = vmatpush3.bf16.msra.mxu0 %v4036_v51  ;;  %3084 = vmatprep.mubr.msk.bf16.mxu0 %vm3565_vm0, %v3564_v0 }
0x138d   :  { %3082 = vmatprep.subr.bf16.mxu0 %v3564_v0 }
0x1390   :  { %3083 = vmatpush3.bf16.msra.mxu0 %v4042_v42 }
0x1391   :  { %3096 = vmatprep.subr.bf16.mxu0 %v3564_v0 }
0x1393   :  { %3085 = vmatmul.mubr.msk.bf16.vlgmr.msra.gmra.mxu0 %vm248_vm6, %v2228_v47 }
0x1394   :  { %3097 = vmatpush3.bf16.msra.mxu0 %v4050_v10  ;;  %3100 = vmatprep.mubr.msk.bf16.mxu0 %vm3565_vm0, %v3564_v0 }
0x1395   :  { %3098 = vmatprep.subr.bf16.mxu0 %v3564_v0 }
0x1398   :  { %3099 = vmatpush3.bf16.msra.mxu0 %v4059_v55 }
0x13ac   :  { %v2275_v51 = vpop.permute.xlu1 %2274 }
0x13ad   :  { %3077 = vmatmul.mubr.msk.bf16.vlgmr.msra.gmra.mxu1 %vm248_vm6, %v2275_v51 }
0x13ae   :  { %3089 = vmatpush3.bf16.msra.mxu1 %v4064_v56  ;;  %3092 = vmatprep.mubr.msk.bf16.mxu1 %vm3565_vm0, %v3564_v0 }
0x13af   :  { %3090 = vmatprep.subr.bf16.mxu1 %v3564_v0 }
0x13b2   :  { %3091 = vmatpush3.bf16.msra.mxu1 %v4070_v45 }
0x13b3   :  { %3104 = vmatprep.subr.mxu1 %v3564_v0 }
0x144b   :  { %v2266_v42 = vpop.f32.mrf.mxu0 }
0x144c   :  { %v2267_v33 = vadd.f32 %v4196_v22, %v2266_v42 }
0x144d   :  { %v3070_v10 = vpop.f32.mrf.mxu0 }
0x144f   :  { %v2269_v37 = vpop.f32.mrf.mxu0 }
0x1451   :  { %v3071_v16 = vpop.f32.mrf.mxu0 }
0x1453   :  { %v2379_v23 = vpop.f32.mrf.mxu0 }
0x1454   :  { %v2380_v55 = vadd.f32 %v4076_v62, %v2379_v23 }
0x1455   :  { %v3086_v4 = vpop.f32.mrf.mxu0 }
0x1456   :  { %v2386_v25 = vrot.slane %v2380_v55, 1  ;;  %v2388_v30 = vrot.slane %v2380_v55, 3  ;;  %v2387_v32 = vrot.slane %v2380_v55, 2  ;;  %v2389_v62 = vrot.slane %v2380_v55, 4 }
0x1457   :  { %v2382_v1 = vpop.f32.mrf.mxu0 }
0x1458   :  { %2422 = vrot.lane.b32.xlu0 %v2386_v25, %s3560_s6  ;;  %v2394_v40 = vadd.f32 %v2386_v25, %v3692_v27  ;;  %v2396_v50 = vadd.f32 %v2388_v30, %v3694_v28  ;;  %v2395_v29 = vadd.f32 %v2387_v32, %v3690_v26  ;;  %v2397_v8 = vadd.f32 %v2389_v62, %v3698_v31 }
0x1459   :  { %v3087_v56 = vpop.f32.mrf.mxu0 }
0x145a   :  { %v2817_v7 = vmul.f32 -1.442695, %v2394_v40  ;;  %v2819_v49 = vmul.f32 -1.442695, %v2396_v50  ;;  %v2818_v19 = vmul.f32 -1.442695, %v2395_v29 }
0x145b   :  { %v2820_v21 = vmul.f32 -1.442695, %v2397_v8  ;;  %v2491_v29 = vrot.slane %v4308_v15, 7 }
0x145c   :  { %2426 = vrot.lane.b32.xlu0 %v2388_v30, %s3560_s6  ;;  %3340 = vpow2.f32 %v2817_v7  ;;  %v2492_v7 = vrot.slane %v4316_v57, 7 }
0x145d   :  { %3342 = vpow2.f32 %v2819_v49 }
0x1469   :  { %v3341_v17 = vpop.eup %3340 }
0x146a   :  { %v3343_v59 = vpop.eup %3342  ;;  %v2410_v2 = vadd.f32 1.0, %v3341_v17 }
0x146b   :  { %v2412_v9 = vadd.f32 1.0, %v3343_v59 }
0x146c   :  { %3344 = vrcp.f32 %v2410_v2 }
0x146d   :  { %v2313_v36 = vpop.f32.mrf.mxu1  ;;  %3346 = vrcp.f32 %v2412_v9 }
0x146e   :  { %v2314_v45 = vadd.f32 %v4178_v20, %v2313_v36 }
0x146f   :  { %v3078_v48 = vpop.f32.mrf.mxu1 }
0x1470   :  { %2327 = vrot.lane.b32.xlu1 %v2314_v45, %s3560_s6  ;;  %v2319_v35 = vadd.f32 %v2314_v45, %v2267_v33 }
0x1471   :  { %v2316_v39 = vpop.f32.mrf.mxu1 }
0x1472   :  { %v2815_v18 = vmul.f32 -1.442695, %v2319_v35 }
0x1473   :  { %v3079_v24 = vpop.f32.mrf.mxu1 }
0x1474   :  { %2424 = vrot.lane.b32.xlu1 %v2387_v32, %s3560_s6  ;;  %3348 = vpow2.f32 %v2815_v18 }
0x1475   :  { %3350 = vpow2.f32 %v2818_v19 }
0x1476   :  { %3352 = vpow2.f32 %v2820_v21 }
0x1478   :  { %2428 = vrot.lane.b32.xlu1 %v2389_v62, %s3560_s6 }
0x1479   :  { %v3345_v44 = vpop.eup %3344 }
0x147a   :  { %v3347_v46 = vpop.eup %3346  ;;  %v2462_v24 = vsub.f32 1.0, %v3345_v44 }
0x147b   :  { %v2464_v40 = vsub.f32 1.0, %v3347_v46 }
0x1481   :  { %v3349_v58 = vpop.eup %3348 }
0x1482   :  { %v2323_v41 = vadd.f32 1.0, %v3349_v58  ;;  %v3351_v6 = vpop.eup %3350 }
0x1483   :  { %v2411_v52 = vadd.f32 1.0, %v3351_v6  ;;  %v3353_v13 = vpop.eup %3352 }
0x1484   :  { %3354 = vrcp.f32 %v2323_v41  ;;  %v2413_v3 = vadd.f32 1.0, %v3353_v13 }
0x1485   :  { %3356 = vrcp.f32 %v2411_v52 }
0x1486   :  { %3358 = vrcp.f32 %v2413_v3 }
0x1491   :  { %v3355_v34 = vpop.eup %3354 }
0x1492   :  { %v3357_v5 = vpop.eup %3356  ;;  %v2337_v17 = vsub.f32 1.0, %v3355_v34  ;;  %v2343_v35 = vmul.f32 %v3355_v34, %v4331_v63 }
0x1493   :  { %v4372_v51 = vpop.eup %3358  ;;  %v2463_v8 = vsub.f32 1.0, %v3357_v5 }
0x1494   :  { %v2465_v63 = vsub.f32 1.0, %v4372_v51 }
0x14ca   :  { %v2423_v54 = vpop.permute.xlu0 %2422 }
0x14cb   :  { %v2434_v43 = vmul.f32 %v3345_v44, %v2423_v54  ;;  %v2499_v54 = vmul.f32 %v3357_v5, %v2491_v29 }
0x14cd   :  { %2442 = vrot.lane.b32.xlu1 %v2434_v43, %s3560_s6 }
0x14ce   :  { %v2427_v60 = vpop.permute.xlu0 %2426 }
0x14cf   :  { %v2436_v53 = vmul.f32 %v3347_v46, %v2427_v60 }
0x14d1   :  { %2446 = vrot.lane.b32.xlu1 %v2436_v53, %s3560_s6 }
0x14e2   :  { %v2328_v11 = vpop.permute.xlu1 %2327 }
0x14e3   :  { %v2330_v14 = vmul.f32 %v3355_v34, %v2328_v11 }
0x14e5   :  { %2332 = vrot.lane.b32.xlu0 %v2330_v14, %s3560_s6 }
0x14e6   :  { %v2425_v61 = vpop.permute.xlu1 %2424 }
0x14e7   :  { %v2435_v47 = vmul.f32 %v3357_v5, %v2425_v61 }
0x14e9   :  { %2444 = vrot.lane.b32.xlu0 %v2435_v47, %s3560_s6 }
0x14ea   :  { %v2429_v42 = vpop.permute.xlu1 %2428 }
0x14eb   :  { %v2437_v10 = vmul.f32 %v4372_v51, %v2429_v42 }
0x14ed   :  { %2448 = vrot.lane.b32.xlu0 %v2437_v10, %s3560_s6 }
0x153f   :  { %v2443_v37 = vpop.permute.xlu1 %2442 }
0x1540   :  { %v2454_v16 = vadd.f32 %v2443_v37, %v3692_v27 }
0x1542   :  { %3360 = vtanh.f32 %v2454_v16 }
0x1543   :  { %v2447_v23 = vpop.permute.xlu1 %2446 }
0x1544   :  { %v2456_v55 = vadd.f32 %v2447_v23, %v3694_v28 }
0x1546   :  { %3362 = vtanh.f32 %v2456_v55 }
0x154f   :  { %v3361_v4 = vpop.eup %3360 }
0x1550   :  { %2470 = vrot.lane.b32.xlu0 %v3361_v4, %s3567_s0 }
0x1553   :  { %v3363_v25 = vpop.eup %3362 }
0x1554   :  { %2474 = vrot.lane.b32.xlu0 %v3363_v25, %s3567_s0 }
0x1557   :  { %v2333_v1 = vpop.permute.xlu0 %2332 }
0x1558   :  { %v2335_v56 = vadd.f32 %v2333_v1, %v2267_v33  ;;  %v2500_v33 = vmul.f32 %v3347_v46, %v2492_v7  ;;  %v2493_v46 = vrot.slane %v4318_v12, 7  ;;  %v2645_v7 = vld [vmem:[%s4443_s9 + $0x8] sm:$0xff] }
0x155a   :  { %3364 = vtanh.f32 %v2335_v56  ;;  %v2501_v41 = vmul.f32 %v4372_v51, %v2493_v46 }
0x155b   :  { %v2445_v30 = vpop.permute.xlu0 %2444 }
0x155c   :  { %v2455_v36 = vadd.f32 %v2445_v30, %v3690_v26  ;;  %v2490_v26 = vrot.slane %v4305_v38, 7 }
0x155e   :  { %3366 = vtanh.f32 %v2455_v36  ;;  %v2498_v49 = vmul.f32 %v3345_v44, %v2490_v26 }
0x155f   :  { %v2449_v45 = vpop.permute.xlu0 %2448 }
0x1560   :  { %v2457_v27 = vadd.f32 %v2449_v45, %v3698_v31 }
0x1562   :  { %3368 = vtanh.f32 %v2457_v27 }
0x1567   :  { %v3365_v48 = vpop.eup %3364 }
0x1568   :  { %2339 = vrot.lane.b32.xlu1 %v3365_v48, %s3567_s0 }
0x156b   :  { %v3367_v28 = vpop.eup %3366 }
0x156c   :  { %2472 = vrot.lane.b32.xlu1 %v3367_v28, %s3567_s0 }
0x156f   :  { %v3369_v39 = vpop.eup %3368 }
0x1570   :  { %2476 = vrot.lane.b32.xlu1 %v3369_v39, %s3567_s0 }
0x15c2   :  { %v2471_v32 = vpop.permute.xlu0 %2470 }
0x15c3   :  { %v2482_v50 = vmul.f32 %v2471_v32, %v2462_v24 }
0x15c5   :  { %v2502_v2 = vadd.f32 %v2498_v49, %v2482_v50  ;;  %v2647_v50 = vld [vmem:[%s4443_s9 + $0x18] sm:$0xff] }
0x15c6   :  { %v2475_v62 = vpop.permute.xlu0 %2474 }
0x15c7   :  { %v2484_v31 = vmul.f32 %v2475_v62, %v2464_v40  ;;  %v2506_v38 = vpack.c.bf16 %v2502_v2, %v2502_v2 }
0x15c9   :  { %v2504_v18 = vadd.f32 %v2500_v33, %v2484_v31  ;;  %v2514_v15 = vunpack.c.l.b16 %v2506_v38  ;;  %v2644_v31 = vld [vmem:[%s4443_s9] sm:$0xff] }
0x15cb   :  { %v2508_v43 = vpack.c.bf16 %v2504_v18, %v2504_v18  ;;  %v2518_v34 = vrot.slane %v2514_v15, 7  ;;  %v2824_v18 = vld [vmem:[%s4444_s10] ss:$0 sm:$0xff] }
0x15cd   :  { %v2516_v52 = vunpack.c.l.b16 %v2508_v43 }
0x15cf   :  { %v2521_v5 = vrot.slane %v2516_v52, 5 }
0x15da   :  { %v2340_v59 = vpop.permute.xlu1 %2339 }
0x15db   :  { %v2342_v9 = vmul.f32 %v2340_v59, %v2337_v17 }
0x15dd   :  { %v4389_v19 = vadd.f32 %v2343_v35, %v2342_v9 }
0x15de   :  { %v2473_v21 = vpop.permute.xlu1 %2472 }
0x15df   :  { %v2571_v57 = vpack.c.bf16 %v4389_v19, %v4389_v19  ;;  %v2483_v44 = vmul.f32 %v2473_v21, %v2463_v8 }
0x15e1   :  { %v2503_v58 = vadd.f32 %v2499_v54, %v2483_v44  ;;  %2573 = vrot.lane.b32.xlu0 %v2571_v57, %s3567_s0 }
0x15e2   :  { %v2477_v60 = vpop.permute.xlu1 %2476 }
0x15e3   :  { %v2507_v53 = vpack.c.bf16 %v2503_v58, %v2503_v58  ;;  %v2485_v6 = vmul.f32 %v2477_v60, %v2465_v63 }
0x15e5   :  { %v2515_v13 = vunpack.c.l.b16 %v2507_v53  ;;  %v2505_v3 = vadd.f32 %v2501_v41, %v2485_v6 }
0x15e7   :  { %v2519_v11 = vrot.slane %v2515_v13, 6  ;;  %v2509_v14 = vpack.c.bf16 %v2505_v3, %v2505_v3 }
0x15e9   :  { %v2520_v12 = vsel %vm413_vm3, %v2519_v11, %v2518_v34  ;;  %v2517_v61 = vunpack.c.l.b16 %v2509_v14 }
0x15ea   :  { %v2522_v47 = vsel %vm416_vm4, %v2521_v5, %v2520_v12 }
0x15eb   :  { %v2523_v42 = vrot.slane %v2517_v61, 4 }
0x15ed   :  { %v2524_v10 = vsel %vm419_vm5, %v2523_v42, %v2522_v47 }
0x15ee   :  { %v2525_v37 = vpack.c.b16 %v2524_v10, %v2524_v10 }
0x15f0   :  { %2526 = vrot.lane.b32.xlu1 %v2525_v37, %s3567_s0 }
0x1653   :  { %v2574_v51 = vpop.permute.xlu0 %2573 }
0x1654   :  { %3101 = vmatmul.mubr.msk.bf16.vlgmr.msra.gmra.mxu0 %vm248_vm6, %v2574_v51 }
0x1662   :  { %v2527_v16 = vpop.permute.xlu1 %2526 }
0x1663   :  { %3093 = vmatmul.mubr.msk.bf16.vlgmr.msra.gmra.mxu1 %vm248_vm6, %v2527_v16 }
0x1664   :  { %3112 = vmatprep.mubr.msk.f32.mxu1 %vm3565_vm0, %v3564_v0  ;;  %3105 = vmatpush3.msra.mxu1 %v2647_v50 }
0x1665   :  { %3106 = vmatprep.subr.mxu1 %v3564_v0 }
0x1714   :  { %v2612_v23 = vpop.f32.mrf.mxu0 }
0x1715   :  { %v2613_v55 = vadd.f32 %v4178_v20, %v2612_v23 }
0x1716   :  { %v3102_v4 = vpop.f32.mrf.mxu0 }
0x1717   :  { %2626 = vrot.lane.b32.xlu0 %v2613_v55, %s3560_s6 }
0x1718   :  { %v2615_v25 = vpop.f32.mrf.mxu0 }
0x171a   :  { %v3103_v1 = vpop.f32.mrf.mxu0 }
0x1723   :  { %v2565_v56 = vpop.f32.mrf.mxu1 }
0x1724   :  { %v2566_v27 = vadd.f32 %v4196_v22, %v2565_v56  ;;  %v2646_v22 = vld [vmem:[%s4443_s9 + $0x10] sm:$0xff] }
0x1725   :  { %v3094_v30 = vpop.f32.mrf.mxu1  ;;  %3107 = vmatpush3.msra.mxu1 %v2646_v22 }
0x1726   :  { %v2618_v48 = vadd.f32 %v2613_v55, %v2566_v27  ;;  %3108 = vmatprep.subr.mxu1 %v3564_v0 }
0x1727   :  { %v2568_v36 = vpop.f32.mrf.mxu1  ;;  %3109 = vmatpush3.msra.mxu1 %v2645_v7 }
0x1728   :  { %v2823_v28 = vmul.f32 -1.442695, %v2618_v48  ;;  %3110 = vmatprep.subr.mxu1 %v3564_v0 }
0x1729   :  { %v3095_v45 = vpop.f32.mrf.mxu1  ;;  %3111 = vmatpush3.msra.mxu1 %v2644_v31 }
0x172a   :  { %3370 = vpow2.f32 %v2823_v28 }
0x1737   :  { %v3371_v39 = vpop.eup %3370 }
0x1738   :  { %v2622_v32 = vadd.f32 1.0, %v3371_v39 }
0x173a   :  { %3372 = vrcp.f32 %v2622_v32 }
0x1747   :  { %v3373_v24 = vpop.eup %3372 }
0x1748   :  { %v2636_v17 = vsub.f32 1.0, %v3373_v24  ;;  %v2642_v59 = vmul.f32 %v3373_v24, %v4389_v19 }
0x1789   :  { %v2627_v62 = vpop.permute.xlu0 %2626 }
0x178a   :  { %v2629_v20 = vmul.f32 %v3373_v24, %v2627_v62 }
0x178c   :  { %2631 = vrot.lane.b32.xlu1 %v2629_v20, %s3560_s6 }
0x17fe   :  { %v2632_v40 = vpop.permute.xlu1 %2631 }
0x17ff   :  { %v2634_v26 = vadd.f32 %v2632_v40, %v2566_v27 }
0x1801   :  { %3374 = vtanh.f32 %v2634_v26 }
0x180e   :  { %v3375_v49 = vpop.eup %3374 }
0x180f   :  { %2638 = vrot.lane.b32.xlu0 %v3375_v49, %s3567_s0 }
0x1881   :  { %v2639_v33 = vpop.permute.xlu0 %2638 }
0x1882   :  { %v2641_v2 = vmul.f32 %v2639_v33, %v2636_v17 }
0x1884   :  { %v2643_v35 = vadd.f32 %v2642_v59, %v2641_v2 }
0x1886   :  { %2656 = vrot.lane.b32.xlu1 %v2643_v35, %s3567_s0 }
0x18f8   :  { %v2657_v9 = vpop.permute.xlu1 %2656 }
0x18f9   :  { %3113 = vmatmul.mubr.msk.f32.vlgmr.msra.gmra.mxu1 %vm248_vm6, %v2657_v9 }
0x19b9   :  { %v2726_v0 = vpop.f32.mrf.mxu1 }
0x19ba   :  { %v2727_v29 = vadd.f32 %v2824_v18, %v2726_v0 }
0x19bb   :  { %v3114_v8 = vpop.f32.mrf.mxu1 }
0x19bc   :  { %2731 = vst.msk [vmem:[#allocation14] sm:$0xf] %vm2730_vm7, %v2727_v29 }
0x19bd   :  { %3536 = shalt.err (!%p3533_p11)
}
0x19be   :  { %2741 = dma.vmem_to_hbm [thread:$0]  %s2739_s14, 64, %s4445_s11, [#allocation4]  }
0x19bf   :  { %3553 = dma.done.wait [#allocation4], 64  }
0x19c0   :  { %3554 = vsyncadd [#allocation4], 4294967232 }
0x19c1   :  { %2745 = vsyncpa [#allocation3], 1 }
0x19c2   :  { %2746 = vsyncpa [#allocation6], 1 }
0x19c3   :  { %2747 = vsyncpa [#allocation9], 1 }
0x19c4   :  { %2748 = vsyncpa [#allocation12], 1 }
0x19c5   :  { %2749 = vsyncpa [#allocation4], 1 }

</bundles_post_ra>
